<compile_context>
chip_gen: v5e
topology: v5e:2x2
jax: 0.10.0
libtpu: 0.0.40
codegen_flags: <defaults>
</compile_context>

<pallas_src>
import math
import functools

import numpy as np
import jax
import jax.numpy as jnp
from jax.experimental import pallas as pl
from jax.experimental.pallas import tpu as pltpu

LEVEL = 5
POOL_TYPE = "max_pool"


# -----------------------------------------------------------------------------
# Static window geometry (identical to SPPLayer._calc_window_size + pooling).
# -----------------------------------------------------------------------------
def _calc_window(pool_size, size):
    win = math.ceil(size / pool_size)
    pad = math.ceil((win * pool_size - size) / 2)
    return win, pad


def _out_size(size, win, pad):
    # torch pooling, ceil_mode=False
    return (size + 2 * pad - win) // win + 1


def _level_windows(i, H, W):
    """Per-cell clipped [start, stop) windows of pyramid level i (all static)."""
    wh, ph = _calc_window(i, H)
    ww, pw = _calc_window(i, W)
    out_h = _out_size(H, wh, ph)
    out_w = _out_size(W, ww, pw)
    rows = [(max(oh * wh - ph, 0), min(oh * wh - ph + wh, H)) for oh in range(out_h)]
    cols = [(max(ow * ww - pw, 0), min(ow * ww - pw + ww, W)) for ow in range(out_w)]
    return rows, cols, wh * ww


def _pyramid(level, H, W):
    """[(i, rows, cols, kernel_area, n_cells, offset)] for i = 1..level-1."""
    meta, off = [], 0
    for i in range(1, level):
        rows, cols, area = _level_windows(i, H, W)
        n = len(rows) * len(cols)
        meta.append((i, rows, cols, area, n, off))
        off += n
    return meta, off


# -----------------------------------------------------------------------------
# Kernels
# -----------------------------------------------------------------------------
def _spp_max_kernel(x_ref, o_ref, *, bt, levels_ge2, cover_ok):
    """x_ref: (bt, H, W, Ct), o_ref: (bt, N_CELLS, Ct)  — C on the lane axis."""
    in_dtype = x_ref.dtype
    # v5e has no bf16 VPU path; upcast once, reduce in f32, cast at the store.
    if jnp.issubdtype(in_dtype, jnp.floating) and jnp.dtype(in_dtype).itemsize < 4:
        compute_dtype = jnp.float32
    else:
        compute_dtype = in_dtype

    for b in range(bt):
        xb = x_ref[b].astype(compute_dtype)                      # (H, W, Ct)
        l2_cells = []
        for (offset, rows, cols, is_l2) in levels_ge2:
            cell = offset
            for (h0, h1) in rows:
                # separable: VPU maxima across the H window, full W at once
                rowred = jnp.max(xb[h0:h1], axis=0)              # (W, Ct)
                for (w0, w1) in cols:
                    v = jnp.max(rowred[w0:w1], axis=0, keepdims=True)  # (1, Ct)
                    o_ref[b, cell:cell + 1, :] = v.astype(o_ref.dtype)
                    if is_l2:
                        l2_cells.append(v)
                    cell += 1
        # level 1 == global max; level-2 windows tile the image, so reuse them.
        if cover_ok and l2_cells:
            g = l2_cells[0]
            for v in l2_cells[1:]:
                g = jnp.maximum(g, v)
        else:
            g = jnp.max(jnp.max(xb, axis=0), axis=0, keepdims=True)    # (1, Ct)
        o_ref[b, 0:1, :] = g.astype(o_ref.dtype)


def _spp_avg_kernel(p_ref, x_ref, o_ref, *, bt, H, W):
    """All pyramid levels as one MXU matmul: (N_CELLS, H*W) @ (H*W, Ct)."""
    P = p_ref[...]                                               # (N_CELLS, H*W) f32
    for b in range(bt):
        xb = x_ref[b].astype(jnp.float32)                        # f32 accumulation
        xf = xb.reshape(H * W, xb.shape[-1])                     # (H*W, Ct)
        res = jnp.dot(P, xf, preferred_element_type=jnp.float32) # (N_CELLS, Ct)
        o_ref[b] = res.astype(o_ref.dtype)


# -----------------------------------------------------------------------------
# Wrapper
# -----------------------------------------------------------------------------
def spp_forward(x, level=LEVEL, pool_type=POOL_TYPE):
    """x: (B, C, H, W) NCHW, torch layout. Returns (B, C * sum_{1<=i<level} i*i)."""
    assert level >= 2, "level must be >= 2"
    B, C, H, W = x.shape
    meta, n_cells = _pyramid(level, H, W)

    # channels-last so C fills the 128 lanes inside the kernel
    x_cl = jnp.transpose(x, (0, 2, 3, 1))                        # (B, H, W, C)

    # channel tile: bound per-block VMEM for huge C (v7x has 64 MiB physical);
    # a partial-C block dim must be a multiple of 128.
    ct = C
    if C > 1024:
        for cand in range(1024, 0, -128):
            if C % cand == 0:
                ct = cand
                break

    # batch tile: amortize ~0.35us/step pipeline overhead, cap block at ~2 MiB
    itemsize = jnp.dtype(x.dtype).itemsize
    lane_c = max(ct, 128)                                        # lane padding
    budget = 2 * 1024 * 1024
    bt = 1
    for cand in range(min(B, 8), 0, -1):
        if B % cand == 0 and cand * H * W * lane_c * itemsize <= budget:
            bt = cand
            break

    grid = (B // bt, C // ct)

    if pool_type == "max_pool":
        levels_ge2 = [(off, rows, cols, i == 2)
                      for (i, rows, cols, area, n, off) in meta if i >= 2]
        cover_ok = False
        for (i, rows, cols, area, n, off) in meta:
            if i == 2:
                cover_ok = (rows[0][0] == 0 and rows[-1][1] == H
                            and cols[0][0] == 0 and cols[-1][1] == W)
        kernel = functools.partial(_spp_max_kernel, bt=bt,
                                   levels_ge2=levels_ge2, cover_ok=cover_ok)
        in_specs = [pl.BlockSpec((bt, H, W, ct), lambda b, c: (b, 0, 0, c))]
        args = (x_cl,)
    else:
        # constant pooling matrix: P[cell, h*W+w] = 1/kernel_area inside window
        # (count_include_pad=True: divide by the FULL kernel area, torch default)
        P = np.zeros((n_cells, H * W), dtype=np.float32)
        for (i, rows, cols, area, n, off) in meta:
            cell = off
            for (h0, h1) in rows:
                for (w0, w1) in cols:
                    for h in range(h0, h1):
                        P[cell, h * W + w0:h * W + w1] = 1.0 / float(area)
                    cell += 1
        kernel = functools.partial(_spp_avg_kernel, bt=bt, H=H, W=W)
        in_specs = [pl.BlockSpec((n_cells, H * W), lambda b, c: (0, 0)),
                    pl.BlockSpec((bt, H, W, ct), lambda b, c: (b, 0, 0, c))]
        args = (jnp.asarray(P), x_cl)

    out = pl.pallas_call(
        kernel,
        grid=grid,
        in_specs=in_specs,
        out_specs=pl.BlockSpec((bt, n_cells, ct), lambda b, c: (b, 0, c)),
        out_shape=jax.ShapeDtypeStruct((B, n_cells, C), x.dtype),
        compiler_params=pltpu.CompilerParams(
            dimension_semantics=("parallel", "parallel")),
    )(*args)

    # torch flatten order: per level (B, C, oh, ow).view(B, -1), then cat(dim=1)
    pieces = []
    for (i, rows, cols, area, n, off) in meta:
        lvl = out[:, off:off + n, :]                             # (B, n, C)
        pieces.append(jnp.transpose(lvl, (0, 2, 1)).reshape(B, C * n))
    return jnp.concatenate(pieces, axis=1)


# -----------------------------------------------------------------------------
# Pure-JAX reference (exact torch window math) for verification
# -----------------------------------------------------------------------------
def spp_reference(x, level=LEVEL, pool_type=POOL_TYPE):
    B, C, H, W = x.shape
    meta, _ = _pyramid(level, H, W)
    feats = []
    for (i, rows, cols, area, n, off) in meta:
        cells = []
        for (h0, h1) in rows:
            for (w0, w1) in cols:
                win = x[:, :, h0:h1, w0:w1]
                if pool_type == "max_pool":
                    cells.append(jnp.max(win, axis=(2, 3)))
                else:
                    cells.append(jnp.sum(win, axis=(2, 3)) / float(area))
        feats.append(jnp.stack(cells, axis=-1).reshape(B, -1))
    return jnp.concatenate(feats, axis=1)


if __name__ == "__main__":
    key = jax.random.PRNGKey(0)
    x = jax.random.normal(key, (2, 4, 16, 16), dtype=jnp.float32)

    # max_pool (module default)
    out_max = jax.block_until_ready(spp_forward(x, pool_type="max_pool"))
    expected_feats = 4 * sum(i * i for i in range(1, LEVEL))     # C * 30 = 120
    assert out_max.shape == (2, expected_feats), out_max.shape
    ref_max = spp_reference(x, pool_type="max_pool")
    assert jnp.allclose(out_max, ref_max, atol=1e-6, rtol=1e-6), "max_pool mismatch"

    # avg_pool (single-matmul path)
    out_avg = jax.block_until_ready(spp_forward(x, pool_type="avg_pool"))
    ref_avg = spp_reference(x, pool_type="avg_pool")
    assert jnp.allclose(out_avg, ref_avg, atol=1e-5, rtol=1e-5), "avg_pool mismatch"

    print("KERNEL_OK")
</pallas_src>

<mosaic_0001>
module attributes {stable_mosaic.version = 11 : i64} {
  func.func @_spp_max_kernel(%arg0: i32, %arg1: i32, %arg2: memref<2x16x16x4xf32, #tpu.memory_space<vmem>>, %arg3: memref<2x30x4xf32, #tpu.memory_space<vmem>>) attributes {dimension_semantics = [#tpu.dimension_semantics<parallel>, #tpu.dimension_semantics<parallel>], iteration_bounds = array<i64: 1, 1>, scalar_prefetch = 0 : i64, scratch_operands = 0 : i64, tpu.core_type = #tpu.core_type<tc>, window_params = [{transform_indices = @transform_0, window_bounds = array<i64: 2, 16, 16, 4>}, {transform_indices = @transform_1, window_bounds = array<i64: 2, 30, 4>}]} {
    %c0 = arith.constant 0 : index
    %c0_0 = arith.constant 0 : index
    %c0_1 = arith.constant 0 : index
    %c0_2 = arith.constant 0 : index
    %0 = vector.load %arg2[%c0, %c0_0, %c0_1, %c0_2] : memref<2x16x16x4xf32, #tpu.memory_space<vmem>>, vector<1x16x16x4xf32>
    %1 = vector.shape_cast %0 : vector<1x16x16x4xf32> to vector<16x16x4xf32>
    %2 = vector.extract_strided_slice %1 {offsets = [0, 0, 0], sizes = [8, 16, 4], strides = [1, 1, 1]} : vector<16x16x4xf32> to vector<8x16x4xf32>
    %cst = arith.constant dense<0xFF800000> : vector<16x4xf32>
    %3 = vector.multi_reduction <maximumf>, %2, %cst [0] : vector<8x16x4xf32> to vector<16x4xf32>
    %4 = vector.extract_strided_slice %3 {offsets = [0, 0], sizes = [8, 4], strides = [1, 1]} : vector<16x4xf32> to vector<8x4xf32>
    %cst_3 = arith.constant dense<0xFF800000> : vector<4xf32>
    %5 = vector.multi_reduction <maximumf>, %4, %cst_3 [0] : vector<8x4xf32> to vector<4xf32>
    %6 = vector.shape_cast %5 : vector<4xf32> to vector<1x4xf32>
    %c0_4 = arith.constant 0 : index
    %c1 = arith.constant 1 : index
    %c0_5 = arith.constant 0 : index
    %7 = vector.load %arg3[%c0_4, %c1, %c0_5] : memref<2x30x4xf32, #tpu.memory_space<vmem>>, vector<1x1x4xf32>
    %8 = vector.shape_cast %7 : vector<1x1x4xf32> to vector<1x4xf32>
    %9 = vector.shape_cast %6 : vector<1x4xf32> to vector<1x1x4xf32>
    tpu.vector_store %arg3[%c0_4, %c1, %c0_5], %9 {strides = array<i32>} : memref<2x30x4xf32, #tpu.memory_space<vmem>>, vector<1x1x4xf32>,
    %10 = vector.extract_strided_slice %3 {offsets = [8, 0], sizes = [8, 4], strides = [1, 1]} : vector<16x4xf32> to vector<8x4xf32>
    %cst_6 = arith.constant dense<0xFF800000> : vector<4xf32>
    %11 = vector.multi_reduction <maximumf>, %10, %cst_6 [0] : vector<8x4xf32> to vector<4xf32>
    %12 = vector.shape_cast %11 : vector<4xf32> to vector<1x4xf32>
    %c0_7 = arith.constant 0 : index
    %c2 = arith.constant 2 : index
    %c0_8 = arith.constant 0 : index
    %13 = vector.load %arg3[%c0_7, %c2, %c0_8] : memref<2x30x4xf32, #tpu.memory_space<vmem>>, vector<1x1x4xf32>
    %14 = vector.shape_cast %13 : vector<1x1x4xf32> to vector<1x4xf32>
    %15 = vector.shape_cast %12 : vector<1x4xf32> to vector<1x1x4xf32>
    tpu.vector_store %arg3[%c0_7, %c2, %c0_8], %15 {strides = array<i32>} : memref<2x30x4xf32, #tpu.memory_space<vmem>>, vector<1x1x4xf32>,
    %16 = vector.extract_strided_slice %1 {offsets = [8, 0, 0], sizes = [8, 16, 4], strides = [1, 1, 1]} : vector<16x16x4xf32> to vector<8x16x4xf32>
    %cst_9 = arith.constant dense<0xFF800000> : vector<16x4xf32>
    %17 = vector.multi_reduction <maximumf>, %16, %cst_9 [0] : vector<8x16x4xf32> to vector<16x4xf32>
    %18 = vector.extract_strided_slice %17 {offsets = [0, 0], sizes = [8, 4], strides = [1, 1]} : vector<16x4xf32> to vector<8x4xf32>
    %cst_10 = arith.constant dense<0xFF800000> : vector<4xf32>
    %19 = vector.multi_reduction <maximumf>, %18, %cst_10 [0] : vector<8x4xf32> to vector<4xf32>
    %20 = vector.shape_cast %19 : vector<4xf32> to vector<1x4xf32>
    %c0_11 = arith.constant 0 : index
    %c3 = arith.constant 3 : index
    %c0_12 = arith.constant 0 : index
    %21 = vector.load %arg3[%c0_11, %c3, %c0_12] : memref<2x30x4xf32, #tpu.memory_space<vmem>>, vector<1x1x4xf32>
    %22 = vector.shape_cast %21 : vector<1x1x4xf32> to vector<1x4xf32>
    %23 = vector.shape_cast %20 : vector<1x4xf32> to vector<1x1x4xf32>
    tpu.vector_store %arg3[%c0_11, %c3, %c0_12], %23 {strides = array<i32>} : memref<2x30x4xf32, #tpu.memory_space<vmem>>, vector<1x1x4xf32>,
    %24 = vector.extract_strided_slice %17 {offsets = [8, 0], sizes = [8, 4], strides = [1, 1]} : vector<16x4xf32> to vector<8x4xf32>
    %cst_13 = arith.constant dense<0xFF800000> : vector<4xf32>
    %25 = vector.multi_reduction <maximumf>, %24, %cst_13 [0] : vector<8x4xf32> to vector<4xf32>
    %26 = vector.shape_cast %25 : vector<4xf32> to vector<1x4xf32>
    %c0_14 = arith.constant 0 : index
    %c4 = arith.constant 4 : index
    %c0_15 = arith.constant 0 : index
    %27 = vector.load %arg3[%c0_14, %c4, %c0_15] : memref<2x30x4xf32, #tpu.memory_space<vmem>>, vector<1x1x4xf32>
    %28 = vector.shape_cast %27 : vector<1x1x4xf32> to vector<1x4xf32>
    %29 = vector.shape_cast %26 : vector<1x4xf32> to vector<1x1x4xf32>
    tpu.vector_store %arg3[%c0_14, %c4, %c0_15], %29 {strides = array<i32>} : memref<2x30x4xf32, #tpu.memory_space<vmem>>, vector<1x1x4xf32>,
    %30 = vector.extract_strided_slice %1 {offsets = [0, 0, 0], sizes = [5, 16, 4], strides = [1, 1, 1]} : vector<16x16x4xf32> to vector<5x16x4xf32>
    %cst_16 = arith.constant dense<0xFF800000> : vector<16x4xf32>
    %31 = vector.multi_reduction <maximumf>, %30, %cst_16 [0] : vector<5x16x4xf32> to vector<16x4xf32>
    %32 = vector.extract_strided_slice %31 {offsets = [0, 0], sizes = [5, 4], strides = [1, 1]} : vector<16x4xf32> to vector<5x4xf32>
    %cst_17 = arith.constant dense<0xFF800000> : vector<4xf32>
    %33 = vector.multi_reduction <maximumf>, %32, %cst_17 [0] : vector<5x4xf32> to vector<4xf32>
    %34 = vector.shape_cast %33 : vector<4xf32> to vector<1x4xf32>
    %c0_18 = arith.constant 0 : index
    %c5 = arith.constant 5 : index
    %c0_19 = arith.constant 0 : index
    %35 = vector.load %arg3[%c0_18, %c5, %c0_19] : memref<2x30x4xf32, #tpu.memory_space<vmem>>, vector<1x1x4xf32>
    %36 = vector.shape_cast %35 : vector<1x1x4xf32> to vector<1x4xf32>
    %37 = vector.shape_cast %34 : vector<1x4xf32> to vector<1x1x4xf32>
    tpu.vector_store %arg3[%c0_18, %c5, %c0_19], %37 {strides = array<i32>} : memref<2x30x4xf32, #tpu.memory_space<vmem>>, vector<1x1x4xf32>,
    %38 = vector.extract_strided_slice %31 {offsets = [5, 0], sizes = [6, 4], strides = [1, 1]} : vector<16x4xf32> to vector<6x4xf32>
    %cst_20 = arith.constant dense<0xFF800000> : vector<4xf32>
    %39 = vector.multi_reduction <maximumf>, %38, %cst_20 [0] : vector<6x4xf32> to vector<4xf32>
    %40 = vector.shape_cast %39 : vector<4xf32> to vector<1x4xf32>
    %c0_21 = arith.constant 0 : index
    %c6 = arith.constant 6 : index
    %c0_22 = arith.constant 0 : index
    %41 = vector.load %arg3[%c0_21, %c6, %c0_22] : memref<2x30x4xf32, #tpu.memory_space<vmem>>, vector<1x1x4xf32>
    %42 = vector.shape_cast %41 : vector<1x1x4xf32> to vector<1x4xf32>
    %43 = vector.shape_cast %40 : vector<1x4xf32> to vector<1x1x4xf32>
    tpu.vector_store %arg3[%c0_21, %c6, %c0_22], %43 {strides = array<i32>} : memref<2x30x4xf32, #tpu.memory_space<vmem>>, vector<1x1x4xf32>,
    %44 = vector.extract_strided_slice %31 {offsets = [11, 0], sizes = [5, 4], strides = [1, 1]} : vector<16x4xf32> to vector<5x4xf32>
    %cst_23 = arith.constant dense<0xFF800000> : vector<4xf32>
    %45 = vector.multi_reduction <maximumf>, %44, %cst_23 [0] : vector<5x4xf32> to vector<4xf32>
    %46 = vector.shape_cast %45 : vector<4xf32> to vector<1x4xf32>
    %c0_24 = arith.constant 0 : index
    %c7 = arith.constant 7 : index
    %c0_25 = arith.constant 0 : index
    %47 = vector.load %arg3[%c0_24, %c7, %c0_25] : memref<2x30x4xf32, #tpu.memory_space<vmem>>, vector<1x1x4xf32>
    %48 = vector.shape_cast %47 : vector<1x1x4xf32> to vector<1x4xf32>
    %49 = vector.shape_cast %46 : vector<1x4xf32> to vector<1x1x4xf32>
    tpu.vector_store %arg3[%c0_24, %c7, %c0_25], %49 {strides = array<i32>} : memref<2x30x4xf32, #tpu.memory_space<vmem>>, vector<1x1x4xf32>,
    %50 = vector.extract_strided_slice %1 {offsets = [5, 0, 0], sizes = [6, 16, 4], strides = [1, 1, 1]} : vector<16x16x4xf32> to vector<6x16x4xf32>
    %cst_26 = arith.constant dense<0xFF800000> : vector<16x4xf32>
    %51 = vector.multi_reduction <maximumf>, %50, %cst_26 [0] : vector<6x16x4xf32> to vector<16x4xf32>
    %52 = vector.extract_strided_slice %51 {offsets = [0, 0], sizes = [5, 4], strides = [1, 1]} : vector<16x4xf32> to vector<5x4xf32>
    %cst_27 = arith.constant dense<0xFF800000> : vector<4xf32>
    %53 = vector.multi_reduction <maximumf>, %52, %cst_27 [0] : vector<5x4xf32> to vector<4xf32>
    %54 = vector.shape_cast %53 : vector<4xf32> to vector<1x4xf32>
    %c0_28 = arith.constant 0 : index
    %c8 = arith.constant 8 : index
    %c0_29 = arith.constant 0 : index
    %55 = vector.load %arg3[%c0_28, %c8, %c0_29] : memref<2x30x4xf32, #tpu.memory_space<vmem>>, vector<1x1x4xf32>
    %56 = vector.shape_cast %55 : vector<1x1x4xf32> to vector<1x4xf32>
    %57 = vector.shape_cast %54 : vector<1x4xf32> to vector<1x1x4xf32>
    tpu.vector_store %arg3[%c0_28, %c8, %c0_29], %57 {strides = array<i32>} : memref<2x30x4xf32, #tpu.memory_space<vmem>>, vector<1x1x4xf32>,
    %58 = vector.extract_strided_slice %51 {offsets = [5, 0], sizes = [6, 4], strides = [1, 1]} : vector<16x4xf32> to vector<6x4xf32>
    %cst_30 = arith.constant dense<0xFF800000> : vector<4xf32>
    %59 = vector.multi_reduction <maximumf>, %58, %cst_30 [0] : vector<6x4xf32> to vector<4xf32>
    %60 = vector.shape_cast %59 : vector<4xf32> to vector<1x4xf32>
    %c0_31 = arith.constant 0 : index
    %c9 = arith.constant 9 : index
    %c0_32 = arith.constant 0 : index
    %61 = vector.load %arg3[%c0_31, %c9, %c0_32] : memref<2x30x4xf32, #tpu.memory_space<vmem>>, vector<1x1x4xf32>
    %62 = vector.shape_cast %61 : vector<1x1x4xf32> to vector<1x4xf32>
    %63 = vector.shape_cast %60 : vector<1x4xf32> to vector<1x1x4xf32>
    tpu.vector_store %arg3[%c0_31, %c9, %c0_32], %63 {strides = array<i32>} : memref<2x30x4xf32, #tpu.memory_space<vmem>>, vector<1x1x4xf32>,
    %64 = vector.extract_strided_slice %51 {offsets = [11, 0], sizes = [5, 4], strides = [1, 1]} : vector<16x4xf32> to vector<5x4xf32>
    %cst_33 = arith.constant dense<0xFF800000> : vector<4xf32>
    %65 = vector.multi_reduction <maximumf>, %64, %cst_33 [0] : vector<5x4xf32> to vector<4xf32>
    %66 = vector.shape_cast %65 : vector<4xf32> to vector<1x4xf32>
    %c0_34 = arith.constant 0 : index
    %c10 = arith.constant 10 : index
    %c0_35 = arith.constant 0 : index
    %67 = vector.load %arg3[%c0_34, %c10, %c0_35] : memref<2x30x4xf32, #tpu.memory_space<vmem>>, vector<1x1x4xf32>
    %68 = vector.shape_cast %67 : vector<1x1x4xf32> to vector<1x4xf32>
    %69 = vector.shape_cast %66 : vector<1x4xf32> to vector<1x1x4xf32>
    tpu.vector_store %arg3[%c0_34, %c10, %c0_35], %69 {strides = array<i32>} : memref<2x30x4xf32, #tpu.memory_space<vmem>>, vector<1x1x4xf32>,
    %70 = vector.extract_strided_slice %1 {offsets = [11, 0, 0], sizes = [5, 16, 4], strides = [1, 1, 1]} : vector<16x16x4xf32> to vector<5x16x4xf32>
    %cst_36 = arith.constant dense<0xFF800000> : vector<16x4xf32>
    %71 = vector.multi_reduction <maximumf>, %70, %cst_36 [0] : vector<5x16x4xf32> to vector<16x4xf32>
    %72 = vector.extract_strided_slice %71 {offsets = [0, 0], sizes = [5, 4], strides = [1, 1]} : vector<16x4xf32> to vector<5x4xf32>
    %cst_37 = arith.constant dense<0xFF800000> : vector<4xf32>
    %73 = vector.multi_reduction <maximumf>, %72, %cst_37 [0] : vector<5x4xf32> to vector<4xf32>
    %74 = vector.shape_cast %73 : vector<4xf32> to vector<1x4xf32>
    %c0_38 = arith.constant 0 : index
    %c11 = arith.constant 11 : index
    %c0_39 = arith.constant 0 : index
    %75 = vector.load %arg3[%c0_38, %c11, %c0_39] : memref<2x30x4xf32, #tpu.memory_space<vmem>>, vector<1x1x4xf32>
    %76 = vector.shape_cast %75 : vector<1x1x4xf32> to vector<1x4xf32>
    %77 = vector.shape_cast %74 : vector<1x4xf32> to vector<1x1x4xf32>
    tpu.vector_store %arg3[%c0_38, %c11, %c0_39], %77 {strides = array<i32>} : memref<2x30x4xf32, #tpu.memory_space<vmem>>, vector<1x1x4xf32>,
    %78 = vector.extract_strided_slice %71 {offsets = [5, 0], sizes = [6, 4], strides = [1, 1]} : vector<16x4xf32> to vector<6x4xf32>
    %cst_40 = arith.constant dense<0xFF800000> : vector<4xf32>
    %79 = vector.multi_reduction <maximumf>, %78, %cst_40 [0] : vector<6x4xf32> to vector<4xf32>
    %80 = vector.shape_cast %79 : vector<4xf32> to vector<1x4xf32>
    %c0_41 = arith.constant 0 : index
    %c12 = arith.constant 12 : index
    %c0_42 = arith.constant 0 : index
    %81 = vector.load %arg3[%c0_41, %c12, %c0_42] : memref<2x30x4xf32, #tpu.memory_space<vmem>>, vector<1x1x4xf32>
    %82 = vector.shape_cast %81 : vector<1x1x4xf32> to vector<1x4xf32>
    %83 = vector.shape_cast %80 : vector<1x4xf32> to vector<1x1x4xf32>
    tpu.vector_store %arg3[%c0_41, %c12, %c0_42], %83 {strides = array<i32>} : memref<2x30x4xf32, #tpu.memory_space<vmem>>, vector<1x1x4xf32>,
    %84 = vector.extract_strided_slice %71 {offsets = [11, 0], sizes = [5, 4], strides = [1, 1]} : vector<16x4xf32> to vector<5x4xf32>
    %cst_43 = arith.constant dense<0xFF800000> : vector<4xf32>
    %85 = vector.multi_reduction <maximumf>, %84, %cst_43 [0] : vector<5x4xf32> to vector<4xf32>
    %86 = vector.shape_cast %85 : vector<4xf32> to vector<1x4xf32>
    %c0_44 = arith.constant 0 : index
    %c13 = arith.constant 13 : index
    %c0_45 = arith.constant 0 : index
    %87 = vector.load %arg3[%c0_44, %c13, %c0_45] : memref<2x30x4xf32, #tpu.memory_space<vmem>>, vector<1x1x4xf32>
    %88 = vector.shape_cast %87 : vector<1x1x4xf32> to vector<1x4xf32>
    %89 = vector.shape_cast %86 : vector<1x4xf32> to vector<1x1x4xf32>
    tpu.vector_store %arg3[%c0_44, %c13, %c0_45], %89 {strides = array<i32>} : memref<2x30x4xf32, #tpu.memory_space<vmem>>, vector<1x1x4xf32>,
    %90 = vector.extract_strided_slice %1 {offsets = [0, 0, 0], sizes = [4, 16, 4], strides = [1, 1, 1]} : vector<16x16x4xf32> to vector<4x16x4xf32>
    %cst_46 = arith.constant dense<0xFF800000> : vector<16x4xf32>
    %91 = vector.multi_reduction <maximumf>, %90, %cst_46 [0] : vector<4x16x4xf32> to vector<16x4xf32>
    %92 = vector.extract_strided_slice %91 {offsets = [0, 0], sizes = [4, 4], strides = [1, 1]} : vector<16x4xf32> to vector<4x4xf32>
    %cst_47 = arith.constant dense<0xFF800000> : vector<4xf32>
    %93 = vector.multi_reduction <maximumf>, %92, %cst_47 [0] : vector<4x4xf32> to vector<4xf32>
    %94 = vector.shape_cast %93 : vector<4xf32> to vector<1x4xf32>
    %c0_48 = arith.constant 0 : index
    %c14 = arith.constant 14 : index
    %c0_49 = arith.constant 0 : index
    %95 = vector.load %arg3[%c0_48, %c14, %c0_49] : memref<2x30x4xf32, #tpu.memory_space<vmem>>, vector<1x1x4xf32>
    %96 = vector.shape_cast %95 : vector<1x1x4xf32> to vector<1x4xf32>
    %97 = vector.shape_cast %94 : vector<1x4xf32> to vector<1x1x4xf32>
    tpu.vector_store %arg3[%c0_48, %c14, %c0_49], %97 {strides = array<i32>} : memref<2x30x4xf32, #tpu.memory_space<vmem>>, vector<1x1x4xf32>,
    %98 = vector.extract_strided_slice %91 {offsets = [4, 0], sizes = [4, 4], strides = [1, 1]} : vector<16x4xf32> to vector<4x4xf32>
    %cst_50 = arith.constant dense<0xFF800000> : vector<4xf32>
    %99 = vector.multi_reduction <maximumf>, %98, %cst_50 [0] : vector<4x4xf32> to vector<4xf32>
    %100 = vector.shape_cast %99 : vector<4xf32> to vector<1x4xf32>
    %c0_51 = arith.constant 0 : index
    %c15 = arith.constant 15 : index
    %c0_52 = arith.constant 0 : index
    %101 = vector.load %arg3[%c0_51, %c15, %c0_52] : memref<2x30x4xf32, #tpu.memory_space<vmem>>, vector<1x1x4xf32>
    %102 = vector.shape_cast %101 : vector<1x1x4xf32> to vector<1x4xf32>
    %103 = vector.shape_cast %100 : vector<1x4xf32> to vector<1x1x4xf32>
    tpu.vector_store %arg3[%c0_51, %c15, %c0_52], %103 {strides = array<i32>} : memref<2x30x4xf32, #tpu.memory_space<vmem>>, vector<1x1x4xf32>,
    %104 = vector.extract_strided_slice %91 {offsets = [8, 0], sizes = [4, 4], strides = [1, 1]} : vector<16x4xf32> to vector<4x4xf32>
    %cst_53 = arith.constant dense<0xFF800000> : vector<4xf32>
    %105 = vector.multi_reduction <maximumf>, %104, %cst_53 [0] : vector<4x4xf32> to vector<4xf32>
    %106 = vector.shape_cast %105 : vector<4xf32> to vector<1x4xf32>
    %c0_54 = arith.constant 0 : index
    %c16 = arith.constant 16 : index
    %c0_55 = arith.constant 0 : index
    %107 = vector.load %arg3[%c0_54, %c16, %c0_55] : memref<2x30x4xf32, #tpu.memory_space<vmem>>, vector<1x1x4xf32>
    %108 = vector.shape_cast %107 : vector<1x1x4xf32> to vector<1x4xf32>
    %109 = vector.shape_cast %106 : vector<1x4xf32> to vector<1x1x4xf32>
    tpu.vector_store %arg3[%c0_54, %c16, %c0_55], %109 {strides = array<i32>} : memref<2x30x4xf32, #tpu.memory_space<vmem>>, vector<1x1x4xf32>,
    %110 = vector.extract_strided_slice %91 {offsets = [12, 0], sizes = [4, 4], strides = [1, 1]} : vector<16x4xf32> to vector<4x4xf32>
    %cst_56 = arith.constant dense<0xFF800000> : vector<4xf32>
    %111 = vector.multi_reduction <maximumf>, %110, %cst_56 [0] : vector<4x4xf32> to vector<4xf32>
    %112 = vector.shape_cast %111 : vector<4xf32> to vector<1x4xf32>
    %c0_57 = arith.constant 0 : index
    %c17 = arith.constant 17 : index
    %c0_58 = arith.constant 0 : index
    %113 = vector.load %arg3[%c0_57, %c17, %c0_58] : memref<2x30x4xf32, #tpu.memory_space<vmem>>, vector<1x1x4xf32>
    %114 = vector.shape_cast %113 : vector<1x1x4xf32> to vector<1x4xf32>
    %115 = vector.shape_cast %112 : vector<1x4xf32> to vector<1x1x4xf32>
    tpu.vector_store %arg3[%c0_57, %c17, %c0_58], %115 {strides = array<i32>} : memref<2x30x4xf32, #tpu.memory_space<vmem>>, vector<1x1x4xf32>,
    %116 = vector.extract_strided_slice %1 {offsets = [4, 0, 0], sizes = [4, 16, 4], strides = [1, 1, 1]} : vector<16x16x4xf32> to vector<4x16x4xf32>
    %cst_59 = arith.constant dense<0xFF800000> : vector<16x4xf32>
    %117 = vector.multi_reduction <maximumf>, %116, %cst_59 [0] : vector<4x16x4xf32> to vector<16x4xf32>
    %118 = vector.extract_strided_slice %117 {offsets = [0, 0], sizes = [4, 4], strides = [1, 1]} : vector<16x4xf32> to vector<4x4xf32>
    %cst_60 = arith.constant dense<0xFF800000> : vector<4xf32>
    %119 = vector.multi_reduction <maximumf>, %118, %cst_60 [0] : vector<4x4xf32> to vector<4xf32>
    %120 = vector.shape_cast %119 : vector<4xf32> to vector<1x4xf32>
    %c0_61 = arith.constant 0 : index
    %c18 = arith.constant 18 : index
    %c0_62 = arith.constant 0 : index
    %121 = vector.load %arg3[%c0_61, %c18, %c0_62] : memref<2x30x4xf32, #tpu.memory_space<vmem>>, vector<1x1x4xf32>
    %122 = vector.shape_cast %121 : vector<1x1x4xf32> to vector<1x4xf32>
    %123 = vector.shape_cast %120 : vector<1x4xf32> to vector<1x1x4xf32>
    tpu.vector_store %arg3[%c0_61, %c18, %c0_62], %123 {strides = array<i32>} : memref<2x30x4xf32, #tpu.memory_space<vmem>>, vector<1x1x4xf32>,
    %124 = vector.extract_strided_slice %117 {offsets = [4, 0], sizes = [4, 4], strides = [1, 1]} : vector<16x4xf32> to vector<4x4xf32>
    %cst_63 = arith.constant dense<0xFF800000> : vector<4xf32>
    %125 = vector.multi_reduction <maximumf>, %124, %cst_63 [0] : vector<4x4xf32> to vector<4xf32>
    %126 = vector.shape_cast %125 : vector<4xf32> to vector<1x4xf32>
    %c0_64 = arith.constant 0 : index
    %c19 = arith.constant 19 : index
    %c0_65 = arith.constant 0 : index
    %127 = vector.load %arg3[%c0_64, %c19, %c0_65] : memref<2x30x4xf32, #tpu.memory_space<vmem>>, vector<1x1x4xf32>
    %128 = vector.shape_cast %127 : vector<1x1x4xf32> to vector<1x4xf32>
    %129 = vector.shape_cast %126 : vector<1x4xf32> to vector<1x1x4xf32>
    tpu.vector_store %arg3[%c0_64, %c19, %c0_65], %129 {strides = array<i32>} : memref<2x30x4xf32, #tpu.memory_space<vmem>>, vector<1x1x4xf32>,
    %130 = vector.extract_strided_slice %117 {offsets = [8, 0], sizes = [4, 4], strides = [1, 1]} : vector<16x4xf32> to vector<4x4xf32>
    %cst_66 = arith.constant dense<0xFF800000> : vector<4xf32>
    %131 = vector.multi_reduction <maximumf>, %130, %cst_66 [0] : vector<4x4xf32> to vector<4xf32>
    %132 = vector.shape_cast %131 : vector<4xf32> to vector<1x4xf32>
    %c0_67 = arith.constant 0 : index
    %c20 = arith.constant 20 : index
    %c0_68 = arith.constant 0 : index
    %133 = vector.load %arg3[%c0_67, %c20, %c0_68] : memref<2x30x4xf32, #tpu.memory_space<vmem>>, vector<1x1x4xf32>
    %134 = vector.shape_cast %133 : vector<1x1x4xf32> to vector<1x4xf32>
    %135 = vector.shape_cast %132 : vector<1x4xf32> to vector<1x1x4xf32>
    tpu.vector_store %arg3[%c0_67, %c20, %c0_68], %135 {strides = array<i32>} : memref<2x30x4xf32, #tpu.memory_space<vmem>>, vector<1x1x4xf32>,
    %136 = vector.extract_strided_slice %117 {offsets = [12, 0], sizes = [4, 4], strides = [1, 1]} : vector<16x4xf32> to vector<4x4xf32>
    %cst_69 = arith.constant dense<0xFF800000> : vector<4xf32>
    %137 = vector.multi_reduction <maximumf>, %136, %cst_69 [0] : vector<4x4xf32> to vector<4xf32>
    %138 = vector.shape_cast %137 : vector<4xf32> to vector<1x4xf32>
    %c0_70 = arith.constant 0 : index
    %c21 = arith.constant 21 : index
    %c0_71 = arith.constant 0 : index
    %139 = vector.load %arg3[%c0_70, %c21, %c0_71] : memref<2x30x4xf32, #tpu.memory_space<vmem>>, vector<1x1x4xf32>
    %140 = vector.shape_cast %139 : vector<1x1x4xf32> to vector<1x4xf32>
    %141 = vector.shape_cast %138 : vector<1x4xf32> to vector<1x1x4xf32>
    tpu.vector_store %arg3[%c0_70, %c21, %c0_71], %141 {strides = array<i32>} : memref<2x30x4xf32, #tpu.memory_space<vmem>>, vector<1x1x4xf32>,
    %142 = vector.extract_strided_slice %1 {offsets = [8, 0, 0], sizes = [4, 16, 4], strides = [1, 1, 1]} : vector<16x16x4xf32> to vector<4x16x4xf32>
    %cst_72 = arith.constant dense<0xFF800000> : vector<16x4xf32>
    %143 = vector.multi_reduction <maximumf>, %142, %cst_72 [0] : vector<4x16x4xf32> to vector<16x4xf32>
    %144 = vector.extract_strided_slice %143 {offsets = [0, 0], sizes = [4, 4], strides = [1, 1]} : vector<16x4xf32> to vector<4x4xf32>
    %cst_73 = arith.constant dense<0xFF800000> : vector<4xf32>
    %145 = vector.multi_reduction <maximumf>, %144, %cst_73 [0] : vector<4x4xf32> to vector<4xf32>
    %146 = vector.shape_cast %145 : vector<4xf32> to vector<1x4xf32>
    %c0_74 = arith.constant 0 : index
    %c22 = arith.constant 22 : index
    %c0_75 = arith.constant 0 : index
    %147 = vector.load %arg3[%c0_74, %c22, %c0_75] : memref<2x30x4xf32, #tpu.memory_space<vmem>>, vector<1x1x4xf32>
    %148 = vector.shape_cast %147 : vector<1x1x4xf32> to vector<1x4xf32>
    %149 = vector.shape_cast %146 : vector<1x4xf32> to vector<1x1x4xf32>
    tpu.vector_store %arg3[%c0_74, %c22, %c0_75], %149 {strides = array<i32>} : memref<2x30x4xf32, #tpu.memory_space<vmem>>, vector<1x1x4xf32>,
    %150 = vector.extract_strided_slice %143 {offsets = [4, 0], sizes = [4, 4], strides = [1, 1]} : vector<16x4xf32> to vector<4x4xf32>
    %cst_76 = arith.constant dense<0xFF800000> : vector<4xf32>
    %151 = vector.multi_reduction <maximumf>, %150, %cst_76 [0] : vector<4x4xf32> to vector<4xf32>
    %152 = vector.shape_cast %151 : vector<4xf32> to vector<1x4xf32>
    %c0_77 = arith.constant 0 : index
    %c23 = arith.constant 23 : index
    %c0_78 = arith.constant 0 : index
    %153 = vector.load %arg3[%c0_77, %c23, %c0_78] : memref<2x30x4xf32, #tpu.memory_space<vmem>>, vector<1x1x4xf32>
    %154 = vector.shape_cast %153 : vector<1x1x4xf32> to vector<1x4xf32>
    %155 = vector.shape_cast %152 : vector<1x4xf32> to vector<1x1x4xf32>
    tpu.vector_store %arg3[%c0_77, %c23, %c0_78], %155 {strides = array<i32>} : memref<2x30x4xf32, #tpu.memory_space<vmem>>, vector<1x1x4xf32>,
    %156 = vector.extract_strided_slice %143 {offsets = [8, 0], sizes = [4, 4], strides = [1, 1]} : vector<16x4xf32> to vector<4x4xf32>
    %cst_79 = arith.constant dense<0xFF800000> : vector<4xf32>
    %157 = vector.multi_reduction <maximumf>, %156, %cst_79 [0] : vector<4x4xf32> to vector<4xf32>
    %158 = vector.shape_cast %157 : vector<4xf32> to vector<1x4xf32>
    %c0_80 = arith.constant 0 : index
    %c24 = arith.constant 24 : index
    %c0_81 = arith.constant 0 : index
    %159 = vector.load %arg3[%c0_80, %c24, %c0_81] : memref<2x30x4xf32, #tpu.memory_space<vmem>>, vector<1x1x4xf32>
    %160 = vector.shape_cast %159 : vector<1x1x4xf32> to vector<1x4xf32>
    %161 = vector.shape_cast %158 : vector<1x4xf32> to vector<1x1x4xf32>
    tpu.vector_store %arg3[%c0_80, %c24, %c0_81], %161 {strides = array<i32>} : memref<2x30x4xf32, #tpu.memory_space<vmem>>, vector<1x1x4xf32>,
    %162 = vector.extract_strided_slice %143 {offsets = [12, 0], sizes = [4, 4], strides = [1, 1]} : vector<16x4xf32> to vector<4x4xf32>
    %cst_82 = arith.constant dense<0xFF800000> : vector<4xf32>
    %163 = vector.multi_reduction <maximumf>, %162, %cst_82 [0] : vector<4x4xf32> to vector<4xf32>
    %164 = vector.shape_cast %163 : vector<4xf32> to vector<1x4xf32>
    %c0_83 = arith.constant 0 : index
    %c25 = arith.constant 25 : index
    %c0_84 = arith.constant 0 : index
    %165 = vector.load %arg3[%c0_83, %c25, %c0_84] : memref<2x30x4xf32, #tpu.memory_space<vmem>>, vector<1x1x4xf32>
    %166 = vector.shape_cast %165 : vector<1x1x4xf32> to vector<1x4xf32>
    %167 = vector.shape_cast %164 : vector<1x4xf32> to vector<1x1x4xf32>
    tpu.vector_store %arg3[%c0_83, %c25, %c0_84], %167 {strides = array<i32>} : memref<2x30x4xf32, #tpu.memory_space<vmem>>, vector<1x1x4xf32>,
    %168 = vector.extract_strided_slice %1 {offsets = [12, 0, 0], sizes = [4, 16, 4], strides = [1, 1, 1]} : vector<16x16x4xf32> to vector<4x16x4xf32>
    %cst_85 = arith.constant dense<0xFF800000> : vector<16x4xf32>
    %169 = vector.multi_reduction <maximumf>, %168, %cst_85 [0] : vector<4x16x4xf32> to vector<16x4xf32>
    %170 = vector.extract_strided_slice %169 {offsets = [0, 0], sizes = [4, 4], strides = [1, 1]} : vector<16x4xf32> to vector<4x4xf32>
    %cst_86 = arith.constant dense<0xFF800000> : vector<4xf32>
    %171 = vector.multi_reduction <maximumf>, %170, %cst_86 [0] : vector<4x4xf32> to vector<4xf32>
    %172 = vector.shape_cast %171 : vector<4xf32> to vector<1x4xf32>
    %c0_87 = arith.constant 0 : index
    %c26 = arith.constant 26 : index
    %c0_88 = arith.constant 0 : index
    %173 = vector.load %arg3[%c0_87, %c26, %c0_88] : memref<2x30x4xf32, #tpu.memory_space<vmem>>, vector<1x1x4xf32>
    %174 = vector.shape_cast %173 : vector<1x1x4xf32> to vector<1x4xf32>
    %175 = vector.shape_cast %172 : vector<1x4xf32> to vector<1x1x4xf32>
    tpu.vector_store %arg3[%c0_87, %c26, %c0_88], %175 {strides = array<i32>} : memref<2x30x4xf32, #tpu.memory_space<vmem>>, vector<1x1x4xf32>,
    %176 = vector.extract_strided_slice %169 {offsets = [4, 0], sizes = [4, 4], strides = [1, 1]} : vector<16x4xf32> to vector<4x4xf32>
    %cst_89 = arith.constant dense<0xFF800000> : vector<4xf32>
    %177 = vector.multi_reduction <maximumf>, %176, %cst_89 [0] : vector<4x4xf32> to vector<4xf32>
    %178 = vector.shape_cast %177 : vector<4xf32> to vector<1x4xf32>
    %c0_90 = arith.constant 0 : index
    %c27 = arith.constant 27 : index
    %c0_91 = arith.constant 0 : index
    %179 = vector.load %arg3[%c0_90, %c27, %c0_91] : memref<2x30x4xf32, #tpu.memory_space<vmem>>, vector<1x1x4xf32>
    %180 = vector.shape_cast %179 : vector<1x1x4xf32> to vector<1x4xf32>
    %181 = vector.shape_cast %178 : vector<1x4xf32> to vector<1x1x4xf32>
    tpu.vector_store %arg3[%c0_90, %c27, %c0_91], %181 {strides = array<i32>} : memref<2x30x4xf32, #tpu.memory_space<vmem>>, vector<1x1x4xf32>,
    %182 = vector.extract_strided_slice %169 {offsets = [8, 0], sizes = [4, 4], strides = [1, 1]} : vector<16x4xf32> to vector<4x4xf32>
    %cst_92 = arith.constant dense<0xFF800000> : vector<4xf32>
    %183 = vector.multi_reduction <maximumf>, %182, %cst_92 [0] : vector<4x4xf32> to vector<4xf32>
    %184 = vector.shape_cast %183 : vector<4xf32> to vector<1x4xf32>
    %c0_93 = arith.constant 0 : index
    %c28 = arith.constant 28 : index
    %c0_94 = arith.constant 0 : index
    %185 = vector.load %arg3[%c0_93, %c28, %c0_94] : memref<2x30x4xf32, #tpu.memory_space<vmem>>, vector<1x1x4xf32>
    %186 = vector.shape_cast %185 : vector<1x1x4xf32> to vector<1x4xf32>
    %187 = vector.shape_cast %184 : vector<1x4xf32> to vector<1x1x4xf32>
    tpu.vector_store %arg3[%c0_93, %c28, %c0_94], %187 {strides = array<i32>} : memref<2x30x4xf32, #tpu.memory_space<vmem>>, vector<1x1x4xf32>,
    %188 = vector.extract_strided_slice %169 {offsets = [12, 0], sizes = [4, 4], strides = [1, 1]} : vector<16x4xf32> to vector<4x4xf32>
    %cst_95 = arith.constant dense<0xFF800000> : vector<4xf32>
    %189 = vector.multi_reduction <maximumf>, %188, %cst_95 [0] : vector<4x4xf32> to vector<4xf32>
    %190 = vector.shape_cast %189 : vector<4xf32> to vector<1x4xf32>
    %c0_96 = arith.constant 0 : index
    %c29 = arith.constant 29 : index
    %c0_97 = arith.constant 0 : index
    %191 = vector.load %arg3[%c0_96, %c29, %c0_97] : memref<2x30x4xf32, #tpu.memory_space<vmem>>, vector<1x1x4xf32>
    %192 = vector.shape_cast %191 : vector<1x1x4xf32> to vector<1x4xf32>
    %193 = vector.shape_cast %190 : vector<1x4xf32> to vector<1x1x4xf32>
    tpu.vector_store %arg3[%c0_96, %c29, %c0_97], %193 {strides = array<i32>} : memref<2x30x4xf32, #tpu.memory_space<vmem>>, vector<1x1x4xf32>,
    %194 = arith.maximumf %6, %12 : vector<1x4xf32>
    %195 = arith.maximumf %194, %20 : vector<1x4xf32>
    %196 = arith.maximumf %195, %26 : vector<1x4xf32>
    %c0_98 = arith.constant 0 : index
    %c0_99 = arith.constant 0 : index
    %c0_100 = arith.constant 0 : index
    %197 = vector.load %arg3[%c0_98, %c0_99, %c0_100] : memref<2x30x4xf32, #tpu.memory_space<vmem>>, vector<1x1x4xf32>
    %198 = vector.shape_cast %197 : vector<1x1x4xf32> to vector<1x4xf32>
    %199 = vector.shape_cast %196 : vector<1x4xf32> to vector<1x1x4xf32>
    tpu.vector_store %arg3[%c0_98, %c0_99, %c0_100], %199 {strides = array<i32>} : memref<2x30x4xf32, #tpu.memory_space<vmem>>, vector<1x1x4xf32>,
    %c1_101 = arith.constant 1 : index
    %c0_102 = arith.constant 0 : index
    %c0_103 = arith.constant 0 : index
    %c0_104 = arith.constant 0 : index
    %200 = vector.load %arg2[%c1_101, %c0_102, %c0_103, %c0_104] : memref<2x16x16x4xf32, #tpu.memory_space<vmem>>, vector<1x16x16x4xf32>
    %201 = vector.shape_cast %200 : vector<1x16x16x4xf32> to vector<16x16x4xf32>
    %202 = vector.extract_strided_slice %201 {offsets = [0, 0, 0], sizes = [8, 16, 4], strides = [1, 1, 1]} : vector<16x16x4xf32> to vector<8x16x4xf32>
    %cst_105 = arith.constant dense<0xFF800000> : vector<16x4xf32>
    %203 = vector.multi_reduction <maximumf>, %202, %cst_105 [0] : vector<8x16x4xf32> to vector<16x4xf32>
    %204 = vector.extract_strided_slice %203 {offsets = [0, 0], sizes = [8, 4], strides = [1, 1]} : vector<16x4xf32> to vector<8x4xf32>
    %cst_106 = arith.constant dense<0xFF800000> : vector<4xf32>
    %205 = vector.multi_reduction <maximumf>, %204, %cst_106 [0] : vector<8x4xf32> to vector<4xf32>
    %206 = vector.shape_cast %205 : vector<4xf32> to vector<1x4xf32>
    %c1_107 = arith.constant 1 : index
    %c1_108 = arith.constant 1 : index
    %c0_109 = arith.constant 0 : index
    %207 = vector.load %arg3[%c1_107, %c1_108, %c0_109] : memref<2x30x4xf32, #tpu.memory_space<vmem>>, vector<1x1x4xf32>
    %208 = vector.shape_cast %207 : vector<1x1x4xf32> to vector<1x4xf32>
    %209 = vector.shape_cast %206 : vector<1x4xf32> to vector<1x1x4xf32>
    tpu.vector_store %arg3[%c1_107, %c1_108, %c0_109], %209 {strides = array<i32>} : memref<2x30x4xf32, #tpu.memory_space<vmem>>, vector<1x1x4xf32>,
    %210 = vector.extract_strided_slice %203 {offsets = [8, 0], sizes = [8, 4], strides = [1, 1]} : vector<16x4xf32> to vector<8x4xf32>
    %cst_110 = arith.constant dense<0xFF800000> : vector<4xf32>
    %211 = vector.multi_reduction <maximumf>, %210, %cst_110 [0] : vector<8x4xf32> to vector<4xf32>
    %212 = vector.shape_cast %211 : vector<4xf32> to vector<1x4xf32>
    %c1_111 = arith.constant 1 : index
    %c2_112 = arith.constant 2 : index
    %c0_113 = arith.constant 0 : index
    %213 = vector.load %arg3[%c1_111, %c2_112, %c0_113] : memref<2x30x4xf32, #tpu.memory_space<vmem>>, vector<1x1x4xf32>
    %214 = vector.shape_cast %213 : vector<1x1x4xf32> to vector<1x4xf32>
    %215 = vector.shape_cast %212 : vector<1x4xf32> to vector<1x1x4xf32>
    tpu.vector_store %arg3[%c1_111, %c2_112, %c0_113], %215 {strides = array<i32>} : memref<2x30x4xf32, #tpu.memory_space<vmem>>, vector<1x1x4xf32>,
    %216 = vector.extract_strided_slice %201 {offsets = [8, 0, 0], sizes = [8, 16, 4], strides = [1, 1, 1]} : vector<16x16x4xf32> to vector<8x16x4xf32>
    %cst_114 = arith.constant dense<0xFF800000> : vector<16x4xf32>
    %217 = vector.multi_reduction <maximumf>, %216, %cst_114 [0] : vector<8x16x4xf32> to vector<16x4xf32>
    %218 = vector.extract_strided_slice %217 {offsets = [0, 0], sizes = [8, 4], strides = [1, 1]} : vector<16x4xf32> to vector<8x4xf32>
    %cst_115 = arith.constant dense<0xFF800000> : vector<4xf32>
    %219 = vector.multi_reduction <maximumf>, %218, %cst_115 [0] : vector<8x4xf32> to vector<4xf32>
    %220 = vector.shape_cast %219 : vector<4xf32> to vector<1x4xf32>
    %c1_116 = arith.constant 1 : index
    %c3_117 = arith.constant 3 : index
    %c0_118 = arith.constant 0 : index
    %221 = vector.load %arg3[%c1_116, %c3_117, %c0_118] : memref<2x30x4xf32, #tpu.memory_space<vmem>>, vector<1x1x4xf32>
    %222 = vector.shape_cast %221 : vector<1x1x4xf32> to vector<1x4xf32>
    %223 = vector.shape_cast %220 : vector<1x4xf32> to vector<1x1x4xf32>
    tpu.vector_store %arg3[%c1_116, %c3_117, %c0_118], %223 {strides = array<i32>} : memref<2x30x4xf32, #tpu.memory_space<vmem>>, vector<1x1x4xf32>,
    %224 = vector.extract_strided_slice %217 {offsets = [8, 0], sizes = [8, 4], strides = [1, 1]} : vector<16x4xf32> to vector<8x4xf32>
    %cst_119 = arith.constant dense<0xFF800000> : vector<4xf32>
    %225 = vector.multi_reduction <maximumf>, %224, %cst_119 [0] : vector<8x4xf32> to vector<4xf32>
    %226 = vector.shape_cast %225 : vector<4xf32> to vector<1x4xf32>
    %c1_120 = arith.constant 1 : index
    %c4_121 = arith.constant 4 : index
    %c0_122 = arith.constant 0 : index
    %227 = vector.load %arg3[%c1_120, %c4_121, %c0_122] : memref<2x30x4xf32, #tpu.memory_space<vmem>>, vector<1x1x4xf32>
    %228 = vector.shape_cast %227 : vector<1x1x4xf32> to vector<1x4xf32>
    %229 = vector.shape_cast %226 : vector<1x4xf32> to vector<1x1x4xf32>
    tpu.vector_store %arg3[%c1_120, %c4_121, %c0_122], %229 {strides = array<i32>} : memref<2x30x4xf32, #tpu.memory_space<vmem>>, vector<1x1x4xf32>,
    %230 = vector.extract_strided_slice %201 {offsets = [0, 0, 0], sizes = [5, 16, 4], strides = [1, 1, 1]} : vector<16x16x4xf32> to vector<5x16x4xf32>
    %cst_123 = arith.constant dense<0xFF800000> : vector<16x4xf32>
    %231 = vector.multi_reduction <maximumf>, %230, %cst_123 [0] : vector<5x16x4xf32> to vector<16x4xf32>
    %232 = vector.extract_strided_slice %231 {offsets = [0, 0], sizes = [5, 4], strides = [1, 1]} : vector<16x4xf32> to vector<5x4xf32>
    %cst_124 = arith.constant dense<0xFF800000> : vector<4xf32>
    %233 = vector.multi_reduction <maximumf>, %232, %cst_124 [0] : vector<5x4xf32> to vector<4xf32>
    %234 = vector.shape_cast %233 : vector<4xf32> to vector<1x4xf32>
    %c1_125 = arith.constant 1 : index
    %c5_126 = arith.constant 5 : index
    %c0_127 = arith.constant 0 : index
    %235 = vector.load %arg3[%c1_125, %c5_126, %c0_127] : memref<2x30x4xf32, #tpu.memory_space<vmem>>, vector<1x1x4xf32>
    %236 = vector.shape_cast %235 : vector<1x1x4xf32> to vector<1x4xf32>
    %237 = vector.shape_cast %234 : vector<1x4xf32> to vector<1x1x4xf32>
    tpu.vector_store %arg3[%c1_125, %c5_126, %c0_127], %237 {strides = array<i32>} : memref<2x30x4xf32, #tpu.memory_space<vmem>>, vector<1x1x4xf32>,
    %238 = vector.extract_strided_slice %231 {offsets = [5, 0], sizes = [6, 4], strides = [1, 1]} : vector<16x4xf32> to vector<6x4xf32>
    %cst_128 = arith.constant dense<0xFF800000> : vector<4xf32>
    %239 = vector.multi_reduction <maximumf>, %238, %cst_128 [0] : vector<6x4xf32> to vector<4xf32>
    %240 = vector.shape_cast %239 : vector<4xf32> to vector<1x4xf32>
    %c1_129 = arith.constant 1 : index
    %c6_130 = arith.constant 6 : index
    %c0_131 = arith.constant 0 : index
    %241 = vector.load %arg3[%c1_129, %c6_130, %c0_131] : memref<2x30x4xf32, #tpu.memory_space<vmem>>, vector<1x1x4xf32>
    %242 = vector.shape_cast %241 : vector<1x1x4xf32> to vector<1x4xf32>
    %243 = vector.shape_cast %240 : vector<1x4xf32> to vector<1x1x4xf32>
    tpu.vector_store %arg3[%c1_129, %c6_130, %c0_131], %243 {strides = array<i32>} : memref<2x30x4xf32, #tpu.memory_space<vmem>>, vector<1x1x4xf32>,
    %244 = vector.extract_strided_slice %231 {offsets = [11, 0], sizes = [5, 4], strides = [1, 1]} : vector<16x4xf32> to vector<5x4xf32>
    %cst_132 = arith.constant dense<0xFF800000> : vector<4xf32>
    %245 = vector.multi_reduction <maximumf>, %244, %cst_132 [0] : vector<5x4xf32> to vector<4xf32>
    %246 = vector.shape_cast %245 : vector<4xf32> to vector<1x4xf32>
    %c1_133 = arith.constant 1 : index
    %c7_134 = arith.constant 7 : index
    %c0_135 = arith.constant 0 : index
    %247 = vector.load %arg3[%c1_133, %c7_134, %c0_135] : memref<2x30x4xf32, #tpu.memory_space<vmem>>, vector<1x1x4xf32>
    %248 = vector.shape_cast %247 : vector<1x1x4xf32> to vector<1x4xf32>
    %249 = vector.shape_cast %246 : vector<1x4xf32> to vector<1x1x4xf32>
    tpu.vector_store %arg3[%c1_133, %c7_134, %c0_135], %249 {strides = array<i32>} : memref<2x30x4xf32, #tpu.memory_space<vmem>>, vector<1x1x4xf32>,
    %250 = vector.extract_strided_slice %201 {offsets = [5, 0, 0], sizes = [6, 16, 4], strides = [1, 1, 1]} : vector<16x16x4xf32> to vector<6x16x4xf32>
    %cst_136 = arith.constant dense<0xFF800000> : vector<16x4xf32>
    %251 = vector.multi_reduction <maximumf>, %250, %cst_136 [0] : vector<6x16x4xf32> to vector<16x4xf32>
    %252 = vector.extract_strided_slice %251 {offsets = [0, 0], sizes = [5, 4], strides = [1, 1]} : vector<16x4xf32> to vector<5x4xf32>
    %cst_137 = arith.constant dense<0xFF800000> : vector<4xf32>
    %253 = vector.multi_reduction <maximumf>, %252, %cst_137 [0] : vector<5x4xf32> to vector<4xf32>
    %254 = vector.shape_cast %253 : vector<4xf32> to vector<1x4xf32>
    %c1_138 = arith.constant 1 : index
    %c8_139 = arith.constant 8 : index
    %c0_140 = arith.constant 0 : index
    %255 = vector.load %arg3[%c1_138, %c8_139, %c0_140] : memref<2x30x4xf32, #tpu.memory_space<vmem>>, vector<1x1x4xf32>
    %256 = vector.shape_cast %255 : vector<1x1x4xf32> to vector<1x4xf32>
    %257 = vector.shape_cast %254 : vector<1x4xf32> to vector<1x1x4xf32>
    tpu.vector_store %arg3[%c1_138, %c8_139, %c0_140], %257 {strides = array<i32>} : memref<2x30x4xf32, #tpu.memory_space<vmem>>, vector<1x1x4xf32>,
    %258 = vector.extract_strided_slice %251 {offsets = [5, 0], sizes = [6, 4], strides = [1, 1]} : vector<16x4xf32> to vector<6x4xf32>
    %cst_141 = arith.constant dense<0xFF800000> : vector<4xf32>
    %259 = vector.multi_reduction <maximumf>, %258, %cst_141 [0] : vector<6x4xf32> to vector<4xf32>
    %260 = vector.shape_cast %259 : vector<4xf32> to vector<1x4xf32>
    %c1_142 = arith.constant 1 : index
    %c9_143 = arith.constant 9 : index
    %c0_144 = arith.constant 0 : index
    %261 = vector.load %arg3[%c1_142, %c9_143, %c0_144] : memref<2x30x4xf32, #tpu.memory_space<vmem>>, vector<1x1x4xf32>
    %262 = vector.shape_cast %261 : vector<1x1x4xf32> to vector<1x4xf32>
    %263 = vector.shape_cast %260 : vector<1x4xf32> to vector<1x1x4xf32>
    tpu.vector_store %arg3[%c1_142, %c9_143, %c0_144], %263 {strides = array<i32>} : memref<2x30x4xf32, #tpu.memory_space<vmem>>, vector<1x1x4xf32>,
    %264 = vector.extract_strided_slice %251 {offsets = [11, 0], sizes = [5, 4], strides = [1, 1]} : vector<16x4xf32> to vector<5x4xf32>
    %cst_145 = arith.constant dense<0xFF800000> : vector<4xf32>
    %265 = vector.multi_reduction <maximumf>, %264, %cst_145 [0] : vector<5x4xf32> to vector<4xf32>
    %266 = vector.shape_cast %265 : vector<4xf32> to vector<1x4xf32>
    %c1_146 = arith.constant 1 : index
    %c10_147 = arith.constant 10 : index
    %c0_148 = arith.constant 0 : index
    %267 = vector.load %arg3[%c1_146, %c10_147, %c0_148] : memref<2x30x4xf32, #tpu.memory_space<vmem>>, vector<1x1x4xf32>
    %268 = vector.shape_cast %267 : vector<1x1x4xf32> to vector<1x4xf32>
    %269 = vector.shape_cast %266 : vector<1x4xf32> to vector<1x1x4xf32>
    tpu.vector_store %arg3[%c1_146, %c10_147, %c0_148], %269 {strides = array<i32>} : memref<2x30x4xf32, #tpu.memory_space<vmem>>, vector<1x1x4xf32>,
    %270 = vector.extract_strided_slice %201 {offsets = [11, 0, 0], sizes = [5, 16, 4], strides = [1, 1, 1]} : vector<16x16x4xf32> to vector<5x16x4xf32>
    %cst_149 = arith.constant dense<0xFF800000> : vector<16x4xf32>
    %271 = vector.multi_reduction <maximumf>, %270, %cst_149 [0] : vector<5x16x4xf32> to vector<16x4xf32>
    %272 = vector.extract_strided_slice %271 {offsets = [0, 0], sizes = [5, 4], strides = [1, 1]} : vector<16x4xf32> to vector<5x4xf32>
    %cst_150 = arith.constant dense<0xFF800000> : vector<4xf32>
    %273 = vector.multi_reduction <maximumf>, %272, %cst_150 [0] : vector<5x4xf32> to vector<4xf32>
    %274 = vector.shape_cast %273 : vector<4xf32> to vector<1x4xf32>
    %c1_151 = arith.constant 1 : index
    %c11_152 = arith.constant 11 : index
    %c0_153 = arith.constant 0 : index
    %275 = vector.load %arg3[%c1_151, %c11_152, %c0_153] : memref<2x30x4xf32, #tpu.memory_space<vmem>>, vector<1x1x4xf32>
    %276 = vector.shape_cast %275 : vector<1x1x4xf32> to vector<1x4xf32>
    %277 = vector.shape_cast %274 : vector<1x4xf32> to vector<1x1x4xf32>
    tpu.vector_store %arg3[%c1_151, %c11_152, %c0_153], %277 {strides = array<i32>} : memref<2x30x4xf32, #tpu.memory_space<vmem>>, vector<1x1x4xf32>,
    %278 = vector.extract_strided_slice %271 {offsets = [5, 0], sizes = [6, 4], strides = [1, 1]} : vector<16x4xf32> to vector<6x4xf32>
    %cst_154 = arith.constant dense<0xFF800000> : vector<4xf32>
    %279 = vector.multi_reduction <maximumf>, %278, %cst_154 [0] : vector<6x4xf32> to vector<4xf32>
    %280 = vector.shape_cast %279 : vector<4xf32> to vector<1x4xf32>
    %c1_155 = arith.constant 1 : index
    %c12_156 = arith.constant 12 : index
    %c0_157 = arith.constant 0 : index
    %281 = vector.load %arg3[%c1_155, %c12_156, %c0_157] : memref<2x30x4xf32, #tpu.memory_space<vmem>>, vector<1x1x4xf32>
    %282 = vector.shape_cast %281 : vector<1x1x4xf32> to vector<1x4xf32>
    %283 = vector.shape_cast %280 : vector<1x4xf32> to vector<1x1x4xf32>
    tpu.vector_store %arg3[%c1_155, %c12_156, %c0_157], %283 {strides = array<i32>} : memref<2x30x4xf32, #tpu.memory_space<vmem>>, vector<1x1x4xf32>,
    %284 = vector.extract_strided_slice %271 {offsets = [11, 0], sizes = [5, 4], strides = [1, 1]} : vector<16x4xf32> to vector<5x4xf32>
    %cst_158 = arith.constant dense<0xFF800000> : vector<4xf32>
    %285 = vector.multi_reduction <maximumf>, %284, %cst_158 [0] : vector<5x4xf32> to vector<4xf32>
    %286 = vector.shape_cast %285 : vector<4xf32> to vector<1x4xf32>
    %c1_159 = arith.constant 1 : index
    %c13_160 = arith.constant 13 : index
    %c0_161 = arith.constant 0 : index
    %287 = vector.load %arg3[%c1_159, %c13_160, %c0_161] : memref<2x30x4xf32, #tpu.memory_space<vmem>>, vector<1x1x4xf32>
    %288 = vector.shape_cast %287 : vector<1x1x4xf32> to vector<1x4xf32>
    %289 = vector.shape_cast %286 : vector<1x4xf32> to vector<1x1x4xf32>
    tpu.vector_store %arg3[%c1_159, %c13_160, %c0_161], %289 {strides = array<i32>} : memref<2x30x4xf32, #tpu.memory_space<vmem>>, vector<1x1x4xf32>,
    %290 = vector.extract_strided_slice %201 {offsets = [0, 0, 0], sizes = [4, 16, 4], strides = [1, 1, 1]} : vector<16x16x4xf32> to vector<4x16x4xf32>
    %cst_162 = arith.constant dense<0xFF800000> : vector<16x4xf32>
    %291 = vector.multi_reduction <maximumf>, %290, %cst_162 [0] : vector<4x16x4xf32> to vector<16x4xf32>
    %292 = vector.extract_strided_slice %291 {offsets = [0, 0], sizes = [4, 4], strides = [1, 1]} : vector<16x4xf32> to vector<4x4xf32>
    %cst_163 = arith.constant dense<0xFF800000> : vector<4xf32>
    %293 = vector.multi_reduction <maximumf>, %292, %cst_163 [0] : vector<4x4xf32> to vector<4xf32>
    %294 = vector.shape_cast %293 : vector<4xf32> to vector<1x4xf32>
    %c1_164 = arith.constant 1 : index
    %c14_165 = arith.constant 14 : index
    %c0_166 = arith.constant 0 : index
    %295 = vector.load %arg3[%c1_164, %c14_165, %c0_166] : memref<2x30x4xf32, #tpu.memory_space<vmem>>, vector<1x1x4xf32>
    %296 = vector.shape_cast %295 : vector<1x1x4xf32> to vector<1x4xf32>
    %297 = vector.shape_cast %294 : vector<1x4xf32> to vector<1x1x4xf32>
    tpu.vector_store %arg3[%c1_164, %c14_165, %c0_166], %297 {strides = array<i32>} : memref<2x30x4xf32, #tpu.memory_space<vmem>>, vector<1x1x4xf32>,
    %298 = vector.extract_strided_slice %291 {offsets = [4, 0], sizes = [4, 4], strides = [1, 1]} : vector<16x4xf32> to vector<4x4xf32>
    %cst_167 = arith.constant dense<0xFF800000> : vector<4xf32>
    %299 = vector.multi_reduction <maximumf>, %298, %cst_167 [0] : vector<4x4xf32> to vector<4xf32>
    %300 = vector.shape_cast %299 : vector<4xf32> to vector<1x4xf32>
    %c1_168 = arith.constant 1 : index
    %c15_169 = arith.constant 15 : index
    %c0_170 = arith.constant 0 : index
    %301 = vector.load %arg3[%c1_168, %c15_169, %c0_170] : memref<2x30x4xf32, #tpu.memory_space<vmem>>, vector<1x1x4xf32>
    %302 = vector.shape_cast %301 : vector<1x1x4xf32> to vector<1x4xf32>
    %303 = vector.shape_cast %300 : vector<1x4xf32> to vector<1x1x4xf32>
    tpu.vector_store %arg3[%c1_168, %c15_169, %c0_170], %303 {strides = array<i32>} : memref<2x30x4xf32, #tpu.memory_space<vmem>>, vector<1x1x4xf32>,
    %304 = vector.extract_strided_slice %291 {offsets = [8, 0], sizes = [4, 4], strides = [1, 1]} : vector<16x4xf32> to vector<4x4xf32>
    %cst_171 = arith.constant dense<0xFF800000> : vector<4xf32>
    %305 = vector.multi_reduction <maximumf>, %304, %cst_171 [0] : vector<4x4xf32> to vector<4xf32>
    %306 = vector.shape_cast %305 : vector<4xf32> to vector<1x4xf32>
    %c1_172 = arith.constant 1 : index
    %c16_173 = arith.constant 16 : index
    %c0_174 = arith.constant 0 : index
    %307 = vector.load %arg3[%c1_172, %c16_173, %c0_174] : memref<2x30x4xf32, #tpu.memory_space<vmem>>, vector<1x1x4xf32>
    %308 = vector.shape_cast %307 : vector<1x1x4xf32> to vector<1x4xf32>
    %309 = vector.shape_cast %306 : vector<1x4xf32> to vector<1x1x4xf32>
    tpu.vector_store %arg3[%c1_172, %c16_173, %c0_174], %309 {strides = array<i32>} : memref<2x30x4xf32, #tpu.memory_space<vmem>>, vector<1x1x4xf32>,
    %310 = vector.extract_strided_slice %291 {offsets = [12, 0], sizes = [4, 4], strides = [1, 1]} : vector<16x4xf32> to vector<4x4xf32>
    %cst_175 = arith.constant dense<0xFF800000> : vector<4xf32>
    %311 = vector.multi_reduction <maximumf>, %310, %cst_175 [0] : vector<4x4xf32> to vector<4xf32>
    %312 = vector.shape_cast %311 : vector<4xf32> to vector<1x4xf32>
    %c1_176 = arith.constant 1 : index
    %c17_177 = arith.constant 17 : index
    %c0_178 = arith.constant 0 : index
    %313 = vector.load %arg3[%c1_176, %c17_177, %c0_178] : memref<2x30x4xf32, #tpu.memory_space<vmem>>, vector<1x1x4xf32>
    %314 = vector.shape_cast %313 : vector<1x1x4xf32> to vector<1x4xf32>
    %315 = vector.shape_cast %312 : vector<1x4xf32> to vector<1x1x4xf32>
    tpu.vector_store %arg3[%c1_176, %c17_177, %c0_178], %315 {strides = array<i32>} : memref<2x30x4xf32, #tpu.memory_space<vmem>>, vector<1x1x4xf32>,
    %316 = vector.extract_strided_slice %201 {offsets = [4, 0, 0], sizes = [4, 16, 4], strides = [1, 1, 1]} : vector<16x16x4xf32> to vector<4x16x4xf32>
    %cst_179 = arith.constant dense<0xFF800000> : vector<16x4xf32>
    %317 = vector.multi_reduction <maximumf>, %316, %cst_179 [0] : vector<4x16x4xf32> to vector<16x4xf32>
    %318 = vector.extract_strided_slice %317 {offsets = [0, 0], sizes = [4, 4], strides = [1, 1]} : vector<16x4xf32> to vector<4x4xf32>
    %cst_180 = arith.constant dense<0xFF800000> : vector<4xf32>
    %319 = vector.multi_reduction <maximumf>, %318, %cst_180 [0] : vector<4x4xf32> to vector<4xf32>
    %320 = vector.shape_cast %319 : vector<4xf32> to vector<1x4xf32>
    %c1_181 = arith.constant 1 : index
    %c18_182 = arith.constant 18 : index
    %c0_183 = arith.constant 0 : index
    %321 = vector.load %arg3[%c1_181, %c18_182, %c0_183] : memref<2x30x4xf32, #tpu.memory_space<vmem>>, vector<1x1x4xf32>
    %322 = vector.shape_cast %321 : vector<1x1x4xf32> to vector<1x4xf32>
    %323 = vector.shape_cast %320 : vector<1x4xf32> to vector<1x1x4xf32>
    tpu.vector_store %arg3[%c1_181, %c18_182, %c0_183], %323 {strides = array<i32>} : memref<2x30x4xf32, #tpu.memory_space<vmem>>, vector<1x1x4xf32>,
    %324 = vector.extract_strided_slice %317 {offsets = [4, 0], sizes = [4, 4], strides = [1, 1]} : vector<16x4xf32> to vector<4x4xf32>
    %cst_184 = arith.constant dense<0xFF800000> : vector<4xf32>
    %325 = vector.multi_reduction <maximumf>, %324, %cst_184 [0] : vector<4x4xf32> to vector<4xf32>
    %326 = vector.shape_cast %325 : vector<4xf32> to vector<1x4xf32>
    %c1_185 = arith.constant 1 : index
    %c19_186 = arith.constant 19 : index
    %c0_187 = arith.constant 0 : index
    %327 = vector.load %arg3[%c1_185, %c19_186, %c0_187] : memref<2x30x4xf32, #tpu.memory_space<vmem>>, vector<1x1x4xf32>
    %328 = vector.shape_cast %327 : vector<1x1x4xf32> to vector<1x4xf32>
    %329 = vector.shape_cast %326 : vector<1x4xf32> to vector<1x1x4xf32>
    tpu.vector_store %arg3[%c1_185, %c19_186, %c0_187], %329 {strides = array<i32>} : memref<2x30x4xf32, #tpu.memory_space<vmem>>, vector<1x1x4xf32>,
    %330 = vector.extract_strided_slice %317 {offsets = [8, 0], sizes = [4, 4], strides = [1, 1]} : vector<16x4xf32> to vector<4x4xf32>
    %cst_188 = arith.constant dense<0xFF800000> : vector<4xf32>
    %331 = vector.multi_reduction <maximumf>, %330, %cst_188 [0] : vector<4x4xf32> to vector<4xf32>
    %332 = vector.shape_cast %331 : vector<4xf32> to vector<1x4xf32>
    %c1_189 = arith.constant 1 : index
    %c20_190 = arith.constant 20 : index
    %c0_191 = arith.constant 0 : index
    %333 = vector.load %arg3[%c1_189, %c20_190, %c0_191] : memref<2x30x4xf32, #tpu.memory_space<vmem>>, vector<1x1x4xf32>
    %334 = vector.shape_cast %333 : vector<1x1x4xf32> to vector<1x4xf32>
    %335 = vector.shape_cast %332 : vector<1x4xf32> to vector<1x1x4xf32>
    tpu.vector_store %arg3[%c1_189, %c20_190, %c0_191], %335 {strides = array<i32>} : memref<2x30x4xf32, #tpu.memory_space<vmem>>, vector<1x1x4xf32>,
    %336 = vector.extract_strided_slice %317 {offsets = [12, 0], sizes = [4, 4], strides = [1, 1]} : vector<16x4xf32> to vector<4x4xf32>
    %cst_192 = arith.constant dense<0xFF800000> : vector<4xf32>
    %337 = vector.multi_reduction <maximumf>, %336, %cst_192 [0] : vector<4x4xf32> to vector<4xf32>
    %338 = vector.shape_cast %337 : vector<4xf32> to vector<1x4xf32>
    %c1_193 = arith.constant 1 : index
    %c21_194 = arith.constant 21 : index
    %c0_195 = arith.constant 0 : index
    %339 = vector.load %arg3[%c1_193, %c21_194, %c0_195] : memref<2x30x4xf32, #tpu.memory_space<vmem>>, vector<1x1x4xf32>
    %340 = vector.shape_cast %339 : vector<1x1x4xf32> to vector<1x4xf32>
    %341 = vector.shape_cast %338 : vector<1x4xf32> to vector<1x1x4xf32>
    tpu.vector_store %arg3[%c1_193, %c21_194, %c0_195], %341 {strides = array<i32>} : memref<2x30x4xf32, #tpu.memory_space<vmem>>, vector<1x1x4xf32>,
    %342 = vector.extract_strided_slice %201 {offsets = [8, 0, 0], sizes = [4, 16, 4], strides = [1, 1, 1]} : vector<16x16x4xf32> to vector<4x16x4xf32>
    %cst_196 = arith.constant dense<0xFF800000> : vector<16x4xf32>
    %343 = vector.multi_reduction <maximumf>, %342, %cst_196 [0] : vector<4x16x4xf32> to vector<16x4xf32>
    %344 = vector.extract_strided_slice %343 {offsets = [0, 0], sizes = [4, 4], strides = [1, 1]} : vector<16x4xf32> to vector<4x4xf32>
    %cst_197 = arith.constant dense<0xFF800000> : vector<4xf32>
    %345 = vector.multi_reduction <maximumf>, %344, %cst_197 [0] : vector<4x4xf32> to vector<4xf32>
    %346 = vector.shape_cast %345 : vector<4xf32> to vector<1x4xf32>
    %c1_198 = arith.constant 1 : index
    %c22_199 = arith.constant 22 : index
    %c0_200 = arith.constant 0 : index
    %347 = vector.load %arg3[%c1_198, %c22_199, %c0_200] : memref<2x30x4xf32, #tpu.memory_space<vmem>>, vector<1x1x4xf32>
    %348 = vector.shape_cast %347 : vector<1x1x4xf32> to vector<1x4xf32>
    %349 = vector.shape_cast %346 : vector<1x4xf32> to vector<1x1x4xf32>
    tpu.vector_store %arg3[%c1_198, %c22_199, %c0_200], %349 {strides = array<i32>} : memref<2x30x4xf32, #tpu.memory_space<vmem>>, vector<1x1x4xf32>,
    %350 = vector.extract_strided_slice %343 {offsets = [4, 0], sizes = [4, 4], strides = [1, 1]} : vector<16x4xf32> to vector<4x4xf32>
    %cst_201 = arith.constant dense<0xFF800000> : vector<4xf32>
    %351 = vector.multi_reduction <maximumf>, %350, %cst_201 [0] : vector<4x4xf32> to vector<4xf32>
    %352 = vector.shape_cast %351 : vector<4xf32> to vector<1x4xf32>
    %c1_202 = arith.constant 1 : index
    %c23_203 = arith.constant 23 : index
    %c0_204 = arith.constant 0 : index
    %353 = vector.load %arg3[%c1_202, %c23_203, %c0_204] : memref<2x30x4xf32, #tpu.memory_space<vmem>>, vector<1x1x4xf32>
    %354 = vector.shape_cast %353 : vector<1x1x4xf32> to vector<1x4xf32>
    %355 = vector.shape_cast %352 : vector<1x4xf32> to vector<1x1x4xf32>
    tpu.vector_store %arg3[%c1_202, %c23_203, %c0_204], %355 {strides = array<i32>} : memref<2x30x4xf32, #tpu.memory_space<vmem>>, vector<1x1x4xf32>,
    %356 = vector.extract_strided_slice %343 {offsets = [8, 0], sizes = [4, 4], strides = [1, 1]} : vector<16x4xf32> to vector<4x4xf32>
    %cst_205 = arith.constant dense<0xFF800000> : vector<4xf32>
    %357 = vector.multi_reduction <maximumf>, %356, %cst_205 [0] : vector<4x4xf32> to vector<4xf32>
    %358 = vector.shape_cast %357 : vector<4xf32> to vector<1x4xf32>
    %c1_206 = arith.constant 1 : index
    %c24_207 = arith.constant 24 : index
    %c0_208 = arith.constant 0 : index
    %359 = vector.load %arg3[%c1_206, %c24_207, %c0_208] : memref<2x30x4xf32, #tpu.memory_space<vmem>>, vector<1x1x4xf32>
    %360 = vector.shape_cast %359 : vector<1x1x4xf32> to vector<1x4xf32>
    %361 = vector.shape_cast %358 : vector<1x4xf32> to vector<1x1x4xf32>
    tpu.vector_store %arg3[%c1_206, %c24_207, %c0_208], %361 {strides = array<i32>} : memref<2x30x4xf32, #tpu.memory_space<vmem>>, vector<1x1x4xf32>,
    %362 = vector.extract_strided_slice %343 {offsets = [12, 0], sizes = [4, 4], strides = [1, 1]} : vector<16x4xf32> to vector<4x4xf32>
    %cst_209 = arith.constant dense<0xFF800000> : vector<4xf32>
    %363 = vector.multi_reduction <maximumf>, %362, %cst_209 [0] : vector<4x4xf32> to vector<4xf32>
    %364 = vector.shape_cast %363 : vector<4xf32> to vector<1x4xf32>
    %c1_210 = arith.constant 1 : index
    %c25_211 = arith.constant 25 : index
    %c0_212 = arith.constant 0 : index
    %365 = vector.load %arg3[%c1_210, %c25_211, %c0_212] : memref<2x30x4xf32, #tpu.memory_space<vmem>>, vector<1x1x4xf32>
    %366 = vector.shape_cast %365 : vector<1x1x4xf32> to vector<1x4xf32>
    %367 = vector.shape_cast %364 : vector<1x4xf32> to vector<1x1x4xf32>
    tpu.vector_store %arg3[%c1_210, %c25_211, %c0_212], %367 {strides = array<i32>} : memref<2x30x4xf32, #tpu.memory_space<vmem>>, vector<1x1x4xf32>,
    %368 = vector.extract_strided_slice %201 {offsets = [12, 0, 0], sizes = [4, 16, 4], strides = [1, 1, 1]} : vector<16x16x4xf32> to vector<4x16x4xf32>
    %cst_213 = arith.constant dense<0xFF800000> : vector<16x4xf32>
    %369 = vector.multi_reduction <maximumf>, %368, %cst_213 [0] : vector<4x16x4xf32> to vector<16x4xf32>
    %370 = vector.extract_strided_slice %369 {offsets = [0, 0], sizes = [4, 4], strides = [1, 1]} : vector<16x4xf32> to vector<4x4xf32>
    %cst_214 = arith.constant dense<0xFF800000> : vector<4xf32>
    %371 = vector.multi_reduction <maximumf>, %370, %cst_214 [0] : vector<4x4xf32> to vector<4xf32>
    %372 = vector.shape_cast %371 : vector<4xf32> to vector<1x4xf32>
    %c1_215 = arith.constant 1 : index
    %c26_216 = arith.constant 26 : index
    %c0_217 = arith.constant 0 : index
    %373 = vector.load %arg3[%c1_215, %c26_216, %c0_217] : memref<2x30x4xf32, #tpu.memory_space<vmem>>, vector<1x1x4xf32>
    %374 = vector.shape_cast %373 : vector<1x1x4xf32> to vector<1x4xf32>
    %375 = vector.shape_cast %372 : vector<1x4xf32> to vector<1x1x4xf32>
    tpu.vector_store %arg3[%c1_215, %c26_216, %c0_217], %375 {strides = array<i32>} : memref<2x30x4xf32, #tpu.memory_space<vmem>>, vector<1x1x4xf32>,
    %376 = vector.extract_strided_slice %369 {offsets = [4, 0], sizes = [4, 4], strides = [1, 1]} : vector<16x4xf32> to vector<4x4xf32>
    %cst_218 = arith.constant dense<0xFF800000> : vector<4xf32>
    %377 = vector.multi_reduction <maximumf>, %376, %cst_218 [0] : vector<4x4xf32> to vector<4xf32>
    %378 = vector.shape_cast %377 : vector<4xf32> to vector<1x4xf32>
    %c1_219 = arith.constant 1 : index
    %c27_220 = arith.constant 27 : index
    %c0_221 = arith.constant 0 : index
    %379 = vector.load %arg3[%c1_219, %c27_220, %c0_221] : memref<2x30x4xf32, #tpu.memory_space<vmem>>, vector<1x1x4xf32>
    %380 = vector.shape_cast %379 : vector<1x1x4xf32> to vector<1x4xf32>
    %381 = vector.shape_cast %378 : vector<1x4xf32> to vector<1x1x4xf32>
    tpu.vector_store %arg3[%c1_219, %c27_220, %c0_221], %381 {strides = array<i32>} : memref<2x30x4xf32, #tpu.memory_space<vmem>>, vector<1x1x4xf32>,
    %382 = vector.extract_strided_slice %369 {offsets = [8, 0], sizes = [4, 4], strides = [1, 1]} : vector<16x4xf32> to vector<4x4xf32>
    %cst_222 = arith.constant dense<0xFF800000> : vector<4xf32>
    %383 = vector.multi_reduction <maximumf>, %382, %cst_222 [0] : vector<4x4xf32> to vector<4xf32>
    %384 = vector.shape_cast %383 : vector<4xf32> to vector<1x4xf32>
    %c1_223 = arith.constant 1 : index
    %c28_224 = arith.constant 28 : index
    %c0_225 = arith.constant 0 : index
    %385 = vector.load %arg3[%c1_223, %c28_224, %c0_225] : memref<2x30x4xf32, #tpu.memory_space<vmem>>, vector<1x1x4xf32>
    %386 = vector.shape_cast %385 : vector<1x1x4xf32> to vector<1x4xf32>
    %387 = vector.shape_cast %384 : vector<1x4xf32> to vector<1x1x4xf32>
    tpu.vector_store %arg3[%c1_223, %c28_224, %c0_225], %387 {strides = array<i32>} : memref<2x30x4xf32, #tpu.memory_space<vmem>>, vector<1x1x4xf32>,
    %388 = vector.extract_strided_slice %369 {offsets = [12, 0], sizes = [4, 4], strides = [1, 1]} : vector<16x4xf32> to vector<4x4xf32>
    %cst_226 = arith.constant dense<0xFF800000> : vector<4xf32>
    %389 = vector.multi_reduction <maximumf>, %388, %cst_226 [0] : vector<4x4xf32> to vector<4xf32>
    %390 = vector.shape_cast %389 : vector<4xf32> to vector<1x4xf32>
    %c1_227 = arith.constant 1 : index
    %c29_228 = arith.constant 29 : index
    %c0_229 = arith.constant 0 : index
    %391 = vector.load %arg3[%c1_227, %c29_228, %c0_229] : memref<2x30x4xf32, #tpu.memory_space<vmem>>, vector<1x1x4xf32>
    %392 = vector.shape_cast %391 : vector<1x1x4xf32> to vector<1x4xf32>
    %393 = vector.shape_cast %390 : vector<1x4xf32> to vector<1x1x4xf32>
    tpu.vector_store %arg3[%c1_227, %c29_228, %c0_229], %393 {strides = array<i32>} : memref<2x30x4xf32, #tpu.memory_space<vmem>>, vector<1x1x4xf32>,
    %394 = arith.maximumf %206, %212 : vector<1x4xf32>
    %395 = arith.maximumf %394, %220 : vector<1x4xf32>
    %396 = arith.maximumf %395, %226 : vector<1x4xf32>
    %c1_230 = arith.constant 1 : index
    %c0_231 = arith.constant 0 : index
    %c0_232 = arith.constant 0 : index
    %397 = vector.load %arg3[%c1_230, %c0_231, %c0_232] : memref<2x30x4xf32, #tpu.memory_space<vmem>>, vector<1x1x4xf32>
    %398 = vector.shape_cast %397 : vector<1x1x4xf32> to vector<1x4xf32>
    %399 = vector.shape_cast %396 : vector<1x4xf32> to vector<1x1x4xf32>
    tpu.vector_store %arg3[%c1_230, %c0_231, %c0_232], %399 {strides = array<i32>} : memref<2x30x4xf32, #tpu.memory_space<vmem>>, vector<1x1x4xf32>,
    return
  }
  func.func @transform_0(%arg0: i32, %arg1: i32) -> (i32, i32, i32, i32) {
    %c0_i32 = arith.constant 0 : i32
    %c0_i32_0 = arith.constant 0 : i32
    %c0_i32_1 = arith.constant 0 : i32
    return %arg0, %c0_i32, %c0_i32_0, %arg1 : i32, i32, i32, i32
  }
  func.func @transform_1(%arg0: i32, %arg1: i32) -> (i32, i32, i32) {
    %c0_i32 = arith.constant 0 : i32
    %c0_i32_0 = arith.constant 0 : i32
    return %arg0, %c0_i32, %arg1 : i32, i32, i32
  }
}

</mosaic_0001>

<bundles_post_ra>
// kernel: tpu_custom_call.1
= control target key start
LH: loop header
LB: loop body
LE: loop exit
PB: predicated region body
PF: predicated region fallthrough
CT: control target
= control target key end

     0   :  { %vm40_vm0 = vcmask 31744   ;;  %vm136_vm1 = vcmask 28672   ;;  %vm145_vm2 = vcmask 31749   ;;  %vm147_vm3 = vcmask 26624   ;;  %s1720_s0 = inlined_call_operand.vmem [shape: f32[2,16,16,4], index: 0, kind: input, shape index: {}]   ;;  %s1721_s1 = inlined_call_operand.vmem [shape: f32[2,30,4], index: 1, kind: output, shape index: {}]  }
   0x1   :  { %v8_v0 = vld [vmem:[%s1720_s0] sm:$0xff]  ;;  %v10_v1 = vld [vmem:[%s1720_s0 + $0x10] sm:$0xff]  ;;  %v9_v15 = vld [vmem:[%s1720_s0 + $0x8] sm:$0xff]  ;;  %vm157_vm4 = vcmask 31747   ;;  %vm78_vm5 = vcmask 24576   ;;  %vm238_vm6 = vcmask 27648  }
   0x2   :  { %v12_v2 = vld [vmem:[%s1720_s0 + $0x20] sm:$0xff]  ;;  %v14_v3 = vld [vmem:[%s1720_s0 + $0x30] sm:$0xff]  ;;  %v41_v6 = vsel %vm40_vm0, %v8_v0, -inf  ;;  %v42_v7 = vsel %vm40_vm0, %v10_v1, -inf  ;;  %v11_v19 = vld [vmem:[%s1720_s0 + $0x18] sm:$0xff]  ;;  %v56_v22 = vsel %vm40_vm0, %v9_v15, -inf }
   0x3   :  { %v16_v4 = vld [vmem:[%s1720_s0 + $0x40] sm:$0xff]  ;;  %v18_v5 = vld [vmem:[%s1720_s0 + $0x50] sm:$0xff]  ;;  %v43_v8 = vsel %vm40_vm0, %v12_v2, -inf  ;;  %v45_v12 = vsel %vm40_vm0, %v14_v3, -inf  ;;  %v13_v20 = vld [vmem:[%s1720_s0 + $0x28] sm:$0xff]  ;;  %v57_v27 = vsel %vm40_vm0, %v11_v19, -inf }
   0x4   :  { %v20_v9 = vld [vmem:[%s1720_s0 + $0x60] sm:$0xff]  ;;  %v22_v10 = vld [vmem:[%s1720_s0 + $0x70] sm:$0xff]  ;;  %v853_v11 = vmax.f32 %v41_v6, %v43_v8  ;;  %v857_v13 = vsel %vm40_vm0, %v16_v4, -inf  ;;  %v860_v14 = vsel %vm40_vm0, %v18_v5, -inf  ;;  %v865_v16 = vmax.f32 %v42_v7, %v45_v12  ;;  %v15_v21 = vld [vmem:[%s1720_s0 + $0x38] sm:$0xff] }
   0x5   :  { %v868_v17 = vsel %vm40_vm0, %v20_v9, -inf  ;;  %v871_v18 = vsel %vm40_vm0, %v22_v10, -inf  ;;  %v17_v24 = vld [vmem:[%s1720_s0 + $0x48] sm:$0xff]  ;;  %v19_v25 = vld [vmem:[%s1720_s0 + $0x58] sm:$0xff]  ;;  %v58_v28 = vsel %vm40_vm0, %v13_v20, -inf  ;;  %v60_v29 = vsel %vm40_vm0, %v15_v21, -inf }
   0x6   :  { %v885_v23 = vmax.f32 %v853_v11, %v857_v13  ;;  %v21_v26 = vld [vmem:[%s1720_s0 + $0x68] sm:$0xff]  ;;  %v50_v30 = vmax.f32 %v865_v16, %v860_v14  ;;  %v23_v31 = vld [vmem:[%s1720_s0 + $0x78] sm:$0xff]  ;;  %v904_v32 = vmax.f32 %v56_v22, %v58_v28  ;;  %v906_v33 = vmax.f32 %v57_v27, %v60_v29  ;;  %v24_v35 = vld [vmem:[%s1720_s0 + $0x80] sm:$0xff] }
   0x7   :  { %v909_v34 = vsel %vm40_vm0, %v17_v24, -inf  ;;  %v26_v36 = vld [vmem:[%s1720_s0 + $0x90] sm:$0xff]  ;;  %v64_v38 = vsel %vm40_vm0, %v19_v25, -inf  ;;  %v921_v39 = vsel %vm40_vm0, %v21_v26, -inf  ;;  %v68_v40 = vsel %vm40_vm0, %v23_v31, -inf  ;;  %v28_v41 = vld [vmem:[%s1720_s0 + $0xa0] sm:$0xff] }
   0x8   :  { %v52_v37 = vmax.f32 %v885_v23, %v868_v17  ;;  %v30_v42 = vld [vmem:[%s1720_s0 + $0xb0] sm:$0xff]  ;;  %v54_v43 = vmax.f32 %v50_v30, %v871_v18  ;;  %v63_v44 = vmax.f32 %v904_v32, %v909_v34  ;;  %v65_v45 = vmax.f32 %v906_v33, %v64_v38  ;;  %v32_v47 = vld [vmem:[%s1720_s0 + $0xc0] sm:$0xff]  ;;  %v25_v59 = vld [vmem:[%s1720_s0 + $0x88] sm:$0xff] }
   0x9   :  { %v934_v46 = vmax.f32 %v64_v38, %v68_v40  ;;  %v34_v48 = vld [vmem:[%s1720_s0 + $0xd0] sm:$0xff]  ;;  %v36_v49 = vld [vmem:[%s1720_s0 + $0xe0] sm:$0xff]  ;;  %v949_v51 = vsel %vm40_vm0, %v24_v35, -inf  ;;  %v952_v52 = vsel %vm40_vm0, %v26_v36, -inf  ;;  %v955_v53 = vsel %vm40_vm0, %v28_v41, -inf  ;;  %v27_v60 = vld [vmem:[%s1720_s0 + $0x98] sm:$0xff] }
   0xa   :  { %v38_v50 = vld [vmem:[%s1720_s0 + $0xf0] sm:$0xff]  ;;  %v958_v54 = vsel %vm40_vm0, %v30_v42, -inf  ;;  %v55_v55 = vmax.f32 %v52_v37, %v54_v43  ;;  %v67_v56 = vmax.f32 %v63_v44, %v921_v39  ;;  %v69_v57 = vmax.f32 %v65_v45, %v68_v40  ;;  %v29_v1 = vld [vmem:[%s1720_s0 + $0xa8] sm:$0xff]  ;;  %v31_v2 = vld [vmem:[%s1720_s0 + $0xb8] sm:$0xff] }
   0xb   :  { %v963_v58 = vmax.f32 %v949_v51, %v955_v53  ;;  %v973_v61 = vmax.f32 %v952_v52, %v958_v54  ;;  %v976_v62 = vsel %vm40_vm0, %v32_v47, -inf  ;;  %v979_v63 = vsel %vm40_vm0, %v34_v48, -inf  ;;  %v33_v9 = vld [vmem:[%s1720_s0 + $0xc8] sm:$0xff]  ;;  %v35_v10 = vld [vmem:[%s1720_s0 + $0xd8] sm:$0xff] }
   0xc   :  { %v982_v0 = vsel %vm40_vm0, %v36_v49, -inf  ;;  %v71_v3 = vsel %vm40_vm0, %v55_v55, -inf  ;;  %v70_v4 = vmax.f32 %v67_v56, %v69_v57  ;;  %v994_v6 = vsel %vm40_vm0, %v38_v50, -inf  ;;  %v37_v12 = vld [vmem:[%s1720_s0 + $0xe8] sm:$0xff]  ;;  %v39_v28 = vld [vmem:[%s1720_s0 + $0xf8] sm:$0xff] }
   0xd   :  { %v95_v5 = vmax.f32 %v963_v58, %v976_v62  ;;  %v72_v7 = vrot.slane %v71_v3, 4  ;;  %v97_v8 = vmax.f32 %v973_v61, %v979_v63  ;;  %v1008_v15 = vsel %vm40_vm0, %v25_v59, -inf }
   0xe   :  { %v1011_v19 = vsel %vm40_vm0, %v27_v60, -inf  ;;  %v80_v20 = vsel %vm40_vm0, %v70_v4, -inf  ;;  %v1016_v22 = vsel %vm40_vm0, %v29_v1, -inf  ;;  %v1019_v24 = vsel %vm40_vm0, %v31_v2, -inf }
   0xf   :  { %v99_v21 = vmax.f32 %v95_v5, %v982_v0  ;;  %v73_v25 = vmax.f32 %v71_v3, %v72_v7  ;;  %v81_v26 = vrot.slane %v80_v20, 4  ;;  %v101_v27 = vmax.f32 %v97_v8, %v994_v6 }
  0x10   :  { %v1027_v29 = vmax.f32 %v1008_v15, %v1016_v22  ;;  %v1031_v30 = vmax.f32 %v1011_v19, %v1019_v24  ;;  %v1034_v31 = vsel %vm40_vm0, %v33_v9, -inf  ;;  %v1037_v35 = vsel %vm40_vm0, %v35_v10, -inf }
  0x11   :  { %v1040_v36 = vsel %vm40_vm0, %v37_v12, -inf  ;;  %v74_v37 = vrot.slane %v73_v25, 2  ;;  %v82_v38 = vmax.f32 %v80_v20, %v81_v26  ;;  %v102_v40 = vmax.f32 %v99_v21, %v101_v27 }
  0x12   :  { %v110_v41 = vmax.f32 %v1027_v29, %v1034_v31  ;;  %v112_v42 = vmax.f32 %v1031_v30, %v1037_v35  ;;  %v1047_v43 = vsel %vm40_vm0, %v39_v28, -inf  ;;  %v134_v45 = vmax.f32 %v885_v23, %v865_v16 }
  0x13   :  { %v135_v47 = vmax.f32 %v63_v44, %v906_v33  ;;  %v75_v48 = vmax.f32 %v73_v25, %v74_v37  ;;  %v83_v49 = vrot.slane %v82_v38, 2  ;;  %v118_v50 = vsel %vm40_vm0, %v102_v40, -inf }
  0x14   :  { %v114_v55 = vmax.f32 %v110_v41, %v1040_v36  ;;  %v119_v56 = vrot.slane %v118_v50, 4  ;;  %v116_v57 = vmax.f32 %v112_v42, %v1047_v43  ;;  %v137_v59 = vsel %vm136_vm1, %v134_v45, -inf }
  0x15   :  { %v146_v60 = vsel %vm145_vm2, %v134_v45, -inf  ;;  %v76_v1 = vrot.slane %v75_v48, 1  ;;  %v84_v2 = vmax.f32 %v82_v38, %v83_v49  ;;  %v138_v3 = vrot.slane %v137_v59, 4 }
  0x16   :  { %v148_v23 = vsel %vm147_vm3, %v135_v47, -inf  ;;  %v120_v4 = vmax.f32 %v118_v50, %v119_v56  ;;  %v117_v44 = vmax.f32 %v114_v55, %v116_v57  ;;  %v158_v7 = vsel %vm157_vm4, %v135_v47, -inf }
  0x17   :  { %v149_v5 = vmax.f32 %v146_v60, %v148_v23  ;;  %v1059_v8 = vmax.f32 %v75_v48, %v76_v1  ;;  %v85_v9 = vrot.slane %v84_v2, 1  ;;  %v139_v10 = vmax.f32 %v137_v59, %v138_v3 }
  0x18   :  { %v159_v12 = vrot.slane %v158_v7, 4  ;;  %v121_v20 = vrot.slane %v120_v4, 2  ;;  %v126_v21 = vsel %vm40_vm0, %v117_v44, -inf  ;;  %v1064_v26 = vmax.f32 %v860_v14, %v871_v18 }
  0x19   :  { %v150_v25 = vrot.slane %v149_v5, 4  ;;  %79 = vst.msk [vmem:[%s1721_s1 + $0x1] sm:$0x1] %vm78_vm5, %v1059_v8  ;;  %v1071_v27 = vmax.f32 %v84_v2, %v85_v9  ;;  %v127_v28 = vrot.slane %v126_v21, 4  ;;  %v140_v37 = vrot.slane %v139_v10, 2 }
  0x1a   :  { %v160_v38 = vmax.f32 %v158_v7, %v159_v12  ;;  %v122_v40 = vmax.f32 %v120_v4, %v121_v20  ;;  %v167_v42 = vmax.f32 %v868_v17, %v949_v51  ;;  %v168_v14 = vmax.f32 %v1064_v26, %v952_v52 }
  0x1b   :  { %v151_v41 = vmax.f32 %v149_v5, %v150_v25  ;;  %87 = vst.msk [vmem:[%s1721_s1 + $0x2] sm:$0x1] %vm78_vm5, %v1071_v27  ;;  %v378_v18 = vmax.f32 %v1059_v8, %v1071_v27  ;;  %v128_v45 = vmax.f32 %v126_v21, %v127_v28  ;;  %v141_v47 = vmax.f32 %v139_v10, %v140_v37 }
  0x1c   :  { %v161_v48 = vrot.slane %v160_v38, 2  ;;  %v123_v49 = vrot.slane %v122_v40, 1  ;;  %v169_v55 = vmax.f32 %v167_v42, %v955_v53  ;;  %v172_v51 = vmax.f32 %v921_v39, %v1008_v15 }
  0x1d   :  { %v152_v50 = vrot.slane %v151_v41, 2  ;;  %v129_v52 = vrot.slane %v128_v45, 2  ;;  %v142_v56 = vrot.slane %v141_v47, 1  ;;  %v173_v59 = vmax.f32 %v934_v46, %v1011_v19 }
  0x1e   :  { %v162_v57 = vmax.f32 %v160_v38, %v161_v48  ;;  %v1089_v60 = vmax.f32 %v122_v40, %v123_v49  ;;  %v170_v2 = vmax.f32 %v168_v14, %v169_v55  ;;  %v174_v3 = vmax.f32 %v172_v51, %v1016_v22 }
  0x1f   :  { %v153_v1 = vmax.f32 %v151_v41, %v152_v50  ;;  %v130_v23 = vmax.f32 %v128_v45, %v129_v52  ;;  %v143_v4 = vmax.f32 %v141_v47, %v142_v56  ;;  %v202_v53 = vmax.f32 %v958_v54, %v979_v63 }
  0x20   :  { %v163_v44 = vrot.slane %v162_v57, 1  ;;  %125 = vst.msk [vmem:[%s1721_s1 + $0x3] sm:$0x1] %vm78_vm5, %v1089_v60  ;;  %v176_v19 = vsel %vm136_vm1, %v170_v2, -inf  ;;  %v175_v5 = vmax.f32 %v173_v59, %v174_v3  ;;  %v184_v7 = vsel %vm145_vm2, %v170_v2, -inf }
  0x21   :  { %v154_v15 = vrot.slane %v153_v1, 1  ;;  %v131_v9 = vrot.slane %v130_v23, 1  ;;  %144 = vst.msk [vmem:[%s1721_s1 + $0x5] sm:$0x1] %vm78_vm5, %v143_v4  ;;  %v177_v54 = vrot.slane %v176_v19, 4  ;;  %v1107_v10 = vmax.f32 %v976_v62, %v982_v0 }
  0x22   :  { %v164_v22 = vmax.f32 %v162_v57, %v163_v44  ;;  %v185_v20 = vsel %vm147_vm3, %v175_v5, -inf  ;;  %v194_v21 = vsel %vm157_vm4, %v175_v5, -inf  ;;  %v204_v25 = vmax.f32 %v202_v53, %v994_v6 }
  0x23   :  { %v155_v12 = vmax.f32 %v153_v1, %v154_v15  ;;  %v1112_v28 = vmax.f32 %v130_v23, %v131_v9  ;;  %v178_v37 = vmax.f32 %v176_v19, %v177_v54  ;;  %v186_v38 = vmax.f32 %v184_v7, %v185_v20 }
  0x24   :  { %165 = vst.msk [vmem:[%s1721_s1 + $0x7] sm:$0x1] %vm78_vm5, %v164_v22  ;;  %v195_v40 = vrot.slane %v194_v21, 4  ;;  %v205_v62 = vmax.f32 %v204_v25, %v1107_v10  ;;  %v206_v0 = vmax.f32 %v1019_v24, %v1037_v35  ;;  %v1127_v41 = vmax.f32 %v1034_v31, %v1040_v36 }
  0x25   :  { %156 = vst.msk [vmem:[%s1721_s1 + $0x6] sm:$0x1] %vm78_vm5, %v155_v12  ;;  %v236_v42 = vmax.f32 %v853_v11, %v865_v16  ;;  %v179_v14 = vrot.slane %v178_v37, 2  ;;  %v187_v45 = vrot.slane %v186_v38, 4  ;;  %vm247_vm7 = vcmask 31748  }
  0x26   :  { %133 = vst.msk [vmem:[%s1721_s1 + $0x4] sm:$0x1] %vm78_vm5, %v1112_v28  ;;  %v196_v47 = vmax.f32 %v194_v21, %v195_v40  ;;  %v210_v48 = vsel %vm136_vm1, %v205_v62, -inf  ;;  %v208_v24 = vmax.f32 %v206_v0, %v1047_v43  ;;  %v218_v31 = vsel %vm145_vm2, %v205_v62, -inf }
  0x27   :  { %v239_v36 = vsel %vm238_vm6, %v236_v42, -inf  ;;  %v180_v49 = vmax.f32 %v178_v37, %v179_v14  ;;  %v188_v11 = vmax.f32 %v186_v38, %v187_v45  ;;  %v211_v50 = vrot.slane %v210_v48, 4 }
  0x28   :  { %v197_v16 = vrot.slane %v196_v47, 2  ;;  %v209_v55 = vmax.f32 %v208_v24, %v1127_v41  ;;  %v240_v51 = vrot.slane %v239_v36, 4  ;;  %v237_v52 = vmax.f32 %v904_v32, %v906_v33 }
  0x29   :  { %v181_v56 = vrot.slane %v180_v49, 1  ;;  %v189_v57 = vrot.slane %v188_v11, 2  ;;  %v212_v1 = vmax.f32 %v210_v48, %v211_v50  ;;  %v248_v4 = vsel %vm247_vm7, %v236_v42, -inf }
  0x2a   :  { %v198_v59 = vmax.f32 %v196_v47, %v197_v16  ;;  %v219_v2 = vsel %vm147_vm3, %v209_v55, -inf  ;;  %v228_v3 = vsel %vm157_vm4, %v209_v55, -inf  ;;  %v241_v23 = vmax.f32 %v239_v36, %v240_v51 }
  0x2b   :  { %v182_v44 = vmax.f32 %v180_v49, %v181_v56  ;;  %v190_v53 = vmax.f32 %v188_v11, %v189_v57  ;;  %v213_v19 = vrot.slane %v212_v1, 2  ;;  %v220_v5 = vmax.f32 %v218_v31, %v219_v2 }
  0x2c   :  { %v199_v15 = vrot.slane %v198_v59, 1  ;;  %v229_v7 = vrot.slane %v228_v3, 4  ;;  %v242_v9 = vrot.slane %v241_v23, 2  ;;  %v249_v22 = vrot.slane %v248_v4, 4 }
  0x2d   :  { %183 = vst.msk [vmem:[%s1721_s1 + $0x8] sm:$0x1] %vm78_vm5, %v182_v44  ;;  %v191_v32 = vrot.slane %v190_v53, 1  ;;  %v214_v54 = vmax.f32 %v212_v1, %v213_v19  ;;  %v256_v12 = vsel %vm238_vm6, %v237_v52, -inf  ;;  %v221_v20 = vrot.slane %v220_v5, 4 }
  0x2e   :  { %v200_v33 = vmax.f32 %v198_v59, %v199_v15  ;;  %v230_v21 = vmax.f32 %v228_v3, %v229_v7  ;;  %v243_v25 = vmax.f32 %v241_v23, %v242_v9  ;;  %v250_v37 = vmax.f32 %v248_v4, %v249_v22 }
  0x2f   :  { %v192_v38 = vmax.f32 %v190_v53, %v191_v32  ;;  %v215_v40 = vrot.slane %v214_v54, 1  ;;  %v257_v62 = vrot.slane %v256_v12, 4  ;;  %v264_v0 = vsel %vm247_vm7, %v237_v52, -inf }
  0x30   :  { %201 = vst.msk [vmem:[%s1721_s1 + $0xa] sm:$0x1] %vm78_vm5, %v200_v33  ;;  %v222_v42 = vmax.f32 %v220_v5, %v221_v20  ;;  %v231_v14 = vrot.slane %v230_v21, 2  ;;  %v244_v45 = vrot.slane %v243_v25, 1  ;;  %v251_v47 = vrot.slane %v250_v37, 2 }
  0x31   :  { %193 = vst.msk [vmem:[%s1721_s1 + $0x9] sm:$0x1] %vm78_vm5, %v192_v38  ;;  %v216_v48 = vmax.f32 %v214_v54, %v215_v40  ;;  %v258_v24 = vmax.f32 %v256_v12, %v257_v62  ;;  %v265_v31 = vrot.slane %v264_v0, 4  ;;  %v272_v36 = vmax.f32 %v857_v13, %v868_v17 }
  0x32   :  { %v223_v49 = vrot.slane %v222_v42, 2  ;;  %v232_v11 = vmax.f32 %v230_v21, %v231_v14  ;;  %v245_v16 = vmax.f32 %v243_v25, %v244_v45  ;;  %v252_v50 = vmax.f32 %v250_v37, %v251_v47 }
  0x33   :  { %217 = vst.msk [vmem:[%s1721_s1 + $0xb] sm:$0x1] %vm78_vm5, %v216_v48  ;;  %v259_v55 = vrot.slane %v258_v24, 2  ;;  %v266_v51 = vmax.f32 %v264_v0, %v265_v31  ;;  %v273_v52 = vmax.f32 %v272_v36, %v1064_v26  ;;  %v274_v56 = vmax.f32 %v909_v34, %v921_v39 }
  0x34   :  { %v224_v57 = vmax.f32 %v222_v42, %v223_v49  ;;  %v233_v59 = vrot.slane %v232_v11, 1  ;;  %246 = vst.msk [vmem:[%s1721_s1 + $0xe] sm:$0x1] %vm78_vm5, %v245_v16  ;;  %v253_v13 = vrot.slane %v252_v50, 1  ;;  %v308_v17 = vmax.f32 %v963_v58, %v973_v61 }
  0x35   :  { %v260_v1 = vmax.f32 %v258_v24, %v259_v55  ;;  %v267_v2 = vrot.slane %v266_v51, 2  ;;  %v276_v3 = vsel %vm238_vm6, %v273_v52, -inf  ;;  %v284_v26 = vsel %vm247_vm7, %v273_v52, -inf }
  0x36   :  { %v225_v23 = vrot.slane %v224_v57, 1  ;;  %v234_v4 = vmax.f32 %v232_v11, %v233_v59  ;;  %v254_v34 = vmax.f32 %v252_v50, %v253_v13  ;;  %v277_v39 = vrot.slane %v276_v3, 4 }
  0x37   :  { %v261_v44 = vrot.slane %v260_v1, 1  ;;  %v268_v53 = vmax.f32 %v266_v51, %v267_v2  ;;  %v285_v15 = vrot.slane %v284_v26, 4  ;;  %v275_v19 = vmax.f32 %v274_v56, %v934_v46 }
  0x38   :  { %v226_v5 = vmax.f32 %v224_v57, %v225_v23  ;;  %235 = vst.msk [vmem:[%s1721_s1 + $0xd] sm:$0x1] %vm78_vm5, %v234_v4  ;;  %v278_v58 = vmax.f32 %v276_v3, %v277_v39  ;;  %v310_v61 = vsel %vm238_vm6, %v308_v17, -inf  ;;  %v318_v7 = vsel %vm247_vm7, %v308_v17, -inf }
  0x39   :  { %255 = vst.msk [vmem:[%s1721_s1 + $0xf] sm:$0x1] %vm78_vm5, %v254_v34  ;;  %v262_v9 = vmax.f32 %v260_v1, %v261_v44  ;;  %v269_v22 = vrot.slane %v268_v53, 1  ;;  %v286_v32 = vmax.f32 %v284_v26, %v285_v15  ;;  %v292_v46 = vsel %vm238_vm6, %v275_v19, -inf }
  0x3a   :  { %227 = vst.msk [vmem:[%s1721_s1 + $0xc] sm:$0x1] %vm78_vm5, %v226_v5  ;;  %v279_v33 = vrot.slane %v278_v58, 2  ;;  %v293_v54 = vrot.slane %v292_v46, 4  ;;  %v300_v12 = vsel %vm247_vm7, %v275_v19, -inf  ;;  %v311_v20 = vrot.slane %v310_v61, 4 }
  0x3b   :  { %263 = vst.msk [vmem:[%s1721_s1 + $0x10] sm:$0x1] %vm78_vm5, %v262_v9  ;;  %v270_v21 = vmax.f32 %v268_v53, %v269_v22  ;;  %v287_v25 = vrot.slane %v286_v32, 2  ;;  %v301_v37 = vrot.slane %v300_v12, 4  ;;  %v319_v38 = vrot.slane %v318_v7, 4 }
  0x3c   :  { %v280_v40 = vmax.f32 %v278_v58, %v279_v33  ;;  %v294_v62 = vmax.f32 %v292_v46, %v293_v54  ;;  %v312_v0 = vmax.f32 %v310_v61, %v311_v20  ;;  %v309_v42 = vmax.f32 %v1027_v29, %v1031_v30 }
  0x3d   :  { %271 = vst.msk [vmem:[%s1721_s1 + $0x11] sm:$0x1] %vm78_vm5, %v270_v21  ;;  %v288_v14 = vmax.f32 %v286_v32, %v287_v25  ;;  %v302_v45 = vmax.f32 %v300_v12, %v301_v37  ;;  %v320_v47 = vmax.f32 %v318_v7, %v319_v38  ;;  %v342_v48 = vmax.f32 %v979_v63, %v994_v6  ;;  %v756_v7 = vld [vmem:[%s1720_s0 + $0x110] sm:$0xff]  ;;  %v762_v25 = vld [vmem:[%s1720_s0 + $0x140] sm:$0xff] }
  0x3e   :  { %v281_v24 = vrot.slane %v280_v40, 1  ;;  %v295_v31 = vrot.slane %v294_v62, 2  ;;  %v313_v36 = vrot.slane %v312_v0, 2  ;;  %v326_v49 = vsel %vm238_vm6, %v309_v42, -inf  ;;  %v760_v21 = vld [vmem:[%s1720_s0 + $0x130] sm:$0xff] }
  0x3f   :  { %v289_v11 = vrot.slane %v288_v14, 1  ;;  %v303_v16 = vrot.slane %v302_v45, 2  ;;  %v321_v50 = vrot.slane %v320_v47, 2  ;;  %v327_v29 = vrot.slane %v326_v49, 4 }
  0x40   :  { %v282_v30 = vmax.f32 %v280_v40, %v281_v24  ;;  %v296_v55 = vmax.f32 %v294_v62, %v295_v31  ;;  %v314_v51 = vmax.f32 %v312_v0, %v313_v36  ;;  %v334_v52 = vsel %vm247_vm7, %v309_v42, -inf }
  0x41   :  { %v290_v56 = vmax.f32 %v288_v14, %v289_v11  ;;  %v304_v57 = vmax.f32 %v302_v45, %v303_v16  ;;  %v322_v59 = vmax.f32 %v320_v47, %v321_v50  ;;  %v328_v13 = vmax.f32 %v326_v49, %v327_v29  ;;  %v764_v14 = vld [vmem:[%s1720_s0 + $0x150] sm:$0xff]  ;;  %v766_v45 = vld [vmem:[%s1720_s0 + $0x160] sm:$0xff] }
  0x42   :  { %283 = vst.msk [vmem:[%s1721_s1 + $0x12] sm:$0x1] %vm78_vm5, %v282_v30  ;;  %v297_v63 = vrot.slane %v296_v55, 1  ;;  %v315_v6 = vrot.slane %v314_v51, 1  ;;  %v335_v17 = vrot.slane %v334_v52, 4  ;;  %v343_v1 = vmax.f32 %v1107_v10, %v342_v48  ;;  %v754_v10 = vld [vmem:[%s1720_s0 + $0x100] sm:$0xff] }
  0x43   :  { %291 = vst.msk [vmem:[%s1721_s1 + $0x13] sm:$0x1] %vm78_vm5, %v290_v56  ;;  %v305_v2 = vrot.slane %v304_v57, 1  ;;  %v323_v3 = vrot.slane %v322_v59, 1  ;;  %v329_v26 = vrot.slane %v328_v13, 2  ;;  %v344_v23 = vmax.f32 %v1037_v35, %v1047_v43  ;;  %v768_v50 = vld [vmem:[%s1720_s0 + $0x170] sm:$0xff] }
  0x44   :  { %v298_v4 = vmax.f32 %v296_v55, %v297_v63  ;;  %v316_v34 = vmax.f32 %v314_v51, %v315_v6  ;;  %v336_v39 = vmax.f32 %v334_v52, %v335_v17  ;;  %v346_v44 = vsel %vm238_vm6, %v343_v1, -inf  ;;  %v755_v30 = vld [vmem:[%s1720_s0 + $0x108] sm:$0xff] }
  0x45   :  { %v306_v53 = vmax.f32 %v304_v57, %v305_v2  ;;  %v324_v15 = vmax.f32 %v322_v59, %v323_v3  ;;  %v330_v19 = vmax.f32 %v328_v13, %v329_v26  ;;  %v347_v5 = vrot.slane %v346_v44, 4  ;;  %v757_v57 = vld [vmem:[%s1720_s0 + $0x118] sm:$0xff]  ;;  %v759_v17 = vld [vmem:[%s1720_s0 + $0x128] sm:$0xff] }
  0x46   :  { %299 = vst.msk [vmem:[%s1721_s1 + $0x14] sm:$0x1] %vm78_vm5, %v298_v4  ;;  %v337_v58 = vrot.slane %v336_v39, 2  ;;  %v354_v35 = vsel %vm247_vm7, %v343_v1, -inf  ;;  %v345_v43 = vmax.f32 %v1127_v41, %v344_v23  ;;  %v379_v61 = vmax.f32 %v378_v18, %v1089_v60  ;;  %v758_v41 = vld [vmem:[%s1720_s0 + $0x120] sm:$0xff]  ;;  %v761_v1 = vld [vmem:[%s1720_s0 + $0x138] sm:$0xff] }
  0x47   :  { %307 = vst.msk [vmem:[%s1721_s1 + $0x15] sm:$0x1] %vm78_vm5, %v306_v53  ;;  %v331_v9 = vrot.slane %v330_v19, 1  ;;  %v348_v22 = vmax.f32 %v346_v44, %v347_v5  ;;  %v355_v32 = vrot.slane %v354_v35, 4  ;;  %v415_v46 = vsel %vm40_vm0, %v754_v10, -inf  ;;  %v763_v2 = vld [vmem:[%s1720_s0 + $0x148] sm:$0xff] }
  0x48   :  { %317 = vst.msk [vmem:[%s1721_s1 + $0x16] sm:$0x1] %vm78_vm5, %v316_v34  ;;  %v338_v8 = vmax.f32 %v336_v39, %v337_v58  ;;  %v362_v27 = vsel %vm238_vm6, %v345_v43, -inf  ;;  %v370_v18 = vsel %vm247_vm7, %v345_v43, -inf  ;;  %v380_v60 = vmax.f32 %v379_v61, %v1112_v28  ;;  %v765_v4 = vld [vmem:[%s1720_s0 + $0x158] sm:$0xff]  ;;  %v767_v53 = vld [vmem:[%s1720_s0 + $0x168] sm:$0xff] }
  0x49   :  { %325 = vst.msk [vmem:[%s1721_s1 + $0x17] sm:$0x1] %vm78_vm5, %v324_v15  ;;  %v332_v33 = vmax.f32 %v330_v19, %v331_v9  ;;  %v349_v54 = vrot.slane %v348_v22, 2  ;;  %v356_v12 = vmax.f32 %v354_v35, %v355_v32  ;;  %v363_v20 = vrot.slane %v362_v27, 4  ;;  %v769_v15 = vld [vmem:[%s1720_s0 + $0x178] sm:$0xff]  ;;  %v770_v32 = vld [vmem:[%s1720_s0 + $0x180] sm:$0xff] }
  0x4a   :  { %v339_v37 = vrot.slane %v338_v8, 1  ;;  %v371_v38 = vrot.slane %v370_v18, 4  ;;  %381 = vst.msk [vmem:[%s1721_s1] sm:$0x1] %vm78_vm5, %v380_v60  ;;  %v416_v28 = vsel %vm40_vm0, %v756_v7, -inf  ;;  %v417_v40 = vsel %vm40_vm0, %v758_v41, -inf }
  0x4b   :  { %333 = vst.msk [vmem:[%s1721_s1 + $0x18] sm:$0x1] %vm78_vm5, %v332_v33  ;;  %v350_v62 = vmax.f32 %v348_v22, %v349_v54  ;;  %v357_v0 = vrot.slane %v356_v12, 2  ;;  %v364_v42 = vmax.f32 %v362_v27, %v363_v20  ;;  %v1277_v47 = vmax.f32 %v415_v46, %v417_v40  ;;  %v772_v41 = vld [vmem:[%s1720_s0 + $0x190] sm:$0xff]  ;;  %v774_v46 = vld [vmem:[%s1720_s0 + $0x1a0] sm:$0xff] }
  0x4c   :  { %v340_v48 = vmax.f32 %v338_v8, %v339_v37  ;;  %v372_v24 = vmax.f32 %v370_v18, %v371_v38  ;;  %v419_v31 = vsel %vm40_vm0, %v760_v21, -inf  ;;  %v1281_v36 = vsel %vm40_vm0, %v762_v25, -inf  ;;  %v776_v33 = vld [vmem:[%s1720_s0 + $0x1b0] sm:$0xff]  ;;  %v778_v54 = vld [vmem:[%s1720_s0 + $0x1c0] sm:$0xff] }
  0x4d   :  { %v351_v49 = vrot.slane %v350_v62, 1  ;;  %v358_v11 = vmax.f32 %v356_v12, %v357_v0  ;;  %v365_v16 = vrot.slane %v364_v42, 2  ;;  %v1286_v29 = vmax.f32 %v416_v28, %v419_v31  ;;  %v780_v37 = vld [vmem:[%s1720_s0 + $0x1d0] sm:$0xff]  ;;  %v782_v38 = vld [vmem:[%s1720_s0 + $0x1e0] sm:$0xff]  ;;  %v771_v31 = vld [vmem:[%s1720_s0 + $0x188] sm:$0xff] }
  0x4e   :  { %341 = vst.msk [vmem:[%s1721_s1 + $0x19] sm:$0x1] %vm78_vm5, %v340_v48  ;;  %v373_v55 = vrot.slane %v372_v24, 2  ;;  %v1297_v51 = vmax.f32 %v1277_v47, %v1281_v36  ;;  %v1300_v52 = vsel %vm40_vm0, %v764_v14, -inf  ;;  %v1303_v56 = vsel %vm40_vm0, %v766_v45, -inf  ;;  %v784_v28 = vld [vmem:[%s1720_s0 + $0x1f0] sm:$0xff] }
  0x4f   :  { %v352_v59 = vmax.f32 %v350_v62, %v351_v49  ;;  %v359_v13 = vrot.slane %v358_v11, 1  ;;  %v366_v63 = vmax.f32 %v364_v42, %v365_v16  ;;  %v424_v6 = vmax.f32 %v1286_v29, %v1300_v52  ;;  %v773_v49 = vld [vmem:[%s1720_s0 + $0x198] sm:$0xff] }
  0x50   :  { %v374_v3 = vmax.f32 %v372_v24, %v373_v55  ;;  %v426_v26 = vmax.f32 %v1297_v51, %v1303_v56  ;;  %v1322_v23 = vsel %vm40_vm0, %v768_v50, -inf  ;;  %v430_v34 = vsel %vm40_vm0, %v755_v30, -inf  ;;  %v775_v55 = vld [vmem:[%s1720_s0 + $0x1a8] sm:$0xff] }
  0x51   :  { %353 = vst.msk [vmem:[%s1721_s1 + $0x1a] sm:$0x1] %vm78_vm5, %v352_v59  ;;  %v360_v39 = vmax.f32 %v358_v11, %v359_v13  ;;  %v367_v44 = vrot.slane %v366_v63, 1  ;;  %v428_v10 = vmax.f32 %v424_v6, %v1322_v23  ;;  %v431_v19 = vsel %vm40_vm0, %v757_v57, -inf  ;;  %v777_v57 = vld [vmem:[%s1720_s0 + $0x1b8] sm:$0xff] }
  0x52   :  { %v375_v5 = vrot.slane %v374_v3, 1  ;;  %v432_v58 = vsel %vm40_vm0, %v759_v17, -inf  ;;  %v434_v35 = vsel %vm40_vm0, %v761_v1, -inf  ;;  %v1343_v43 = vsel %vm40_vm0, %v763_v2, -inf  ;;  %v779_v2 = vld [vmem:[%s1720_s0 + $0x1c8] sm:$0xff] }
  0x53   :  { %361 = vst.msk [vmem:[%s1721_s1 + $0x1b] sm:$0x1] %vm78_vm5, %v360_v39  ;;  %v368_v61 = vmax.f32 %v366_v63, %v367_v44  ;;  %v429_v7 = vmax.f32 %v426_v26, %v428_v10  ;;  %v1349_v9 = vmax.f32 %v430_v34, %v432_v58  ;;  %v1351_v22 = vmax.f32 %v431_v19, %v434_v35  ;;  %v783_v26 = vld [vmem:[%s1720_s0 + $0x1e8] sm:$0xff]  ;;  %v785_v58 = vld [vmem:[%s1720_s0 + $0x1f8] sm:$0xff] }
  0x54   :  { %v376_v8 = vmax.f32 %v374_v3, %v375_v5  ;;  %v438_v27 = vsel %vm40_vm0, %v765_v4, -inf  ;;  %v1364_v18 = vsel %vm40_vm0, %v767_v53, -inf  ;;  %v442_v60 = vsel %vm40_vm0, %v769_v15, -inf  ;;  %v781_v3 = vld [vmem:[%s1720_s0 + $0x1d8] sm:$0xff] }
  0x55   :  { %369 = vst.msk [vmem:[%s1721_s1 + $0x1c] sm:$0x1] %vm78_vm5, %v368_v61  ;;  %v445_v12 = vsel %vm40_vm0, %v429_v7, -inf  ;;  %v437_v20 = vmax.f32 %v1349_v9, %v1343_v43  ;;  %v439_v21 = vmax.f32 %v1351_v22, %v438_v27  ;;  %v1381_v25 = vmax.f32 %v438_v27, %v442_v60 }
  0x56   :  { %377 = vst.msk [vmem:[%s1721_s1 + $0x1d] sm:$0x1] %vm78_vm5, %v376_v8  ;;  %v446_v40 = vrot.slane %v445_v12, 4  ;;  %v1397_v62 = vsel %vm40_vm0, %v770_v32, -inf  ;;  %v1400_v0 = vsel %vm40_vm0, %v772_v41, -inf  ;;  %v1403_v42 = vsel %vm40_vm0, %v774_v46, -inf }
  0x57   :  { %v441_v14 = vmax.f32 %v437_v20, %v1364_v18  ;;  %v443_v45 = vmax.f32 %v439_v21, %v442_v60  ;;  %v1408_v48 = vmax.f32 %v1397_v62, %v1403_v42  ;;  %v1411_v24 = vsel %vm40_vm0, %v776_v33, -inf }
  0x58   :  { %v447_v11 = vmax.f32 %v445_v12, %v446_v40  ;;  %v1421_v16 = vmax.f32 %v1400_v0, %v1411_v24  ;;  %v1424_v50 = vsel %vm40_vm0, %v778_v54, -inf  ;;  %v1427_v30 = vsel %vm40_vm0, %v780_v37, -inf }
  0x59   :  { %v444_v59 = vmax.f32 %v441_v14, %v443_v45  ;;  %v469_v13 = vmax.f32 %v1408_v48, %v1424_v50  ;;  %v1438_v63 = vsel %vm40_vm0, %v782_v38, -inf  ;;  %v1441_v6 = vsel %vm40_vm0, %v784_v28, -inf }
  0x5a   :  { %v448_v17 = vrot.slane %v447_v11, 2  ;;  %v471_v1 = vmax.f32 %v1421_v16, %v1427_v30  ;;  %v1455_v4 = vsel %vm40_vm0, %v771_v31, -inf  ;;  %v1458_v34 = vsel %vm40_vm0, %v773_v49, -inf }
  0x5b   :  { %v454_v39 = vsel %vm40_vm0, %v444_v59, -inf  ;;  %v473_v44 = vmax.f32 %v469_v13, %v1438_v63  ;;  %v1463_v10 = vsel %vm40_vm0, %v775_v55, -inf  ;;  %v1466_v53 = vsel %vm40_vm0, %v777_v57, -inf }
  0x5c   :  { %v449_v15 = vmax.f32 %v447_v11, %v448_v17  ;;  %v455_v19 = vrot.slane %v454_v39, 4  ;;  %v475_v5 = vmax.f32 %v471_v1, %v1441_v6  ;;  %v1474_v35 = vmax.f32 %v1455_v4, %v1463_v10 }
  0x5d   :  { %v1478_v61 = vmax.f32 %v1458_v34, %v1466_v53  ;;  %v1481_v7 = vsel %vm40_vm0, %v779_v2, -inf  ;;  %v1484_v32 = vsel %vm40_vm0, %v781_v3, -inf  ;;  %v1487_v41 = vsel %vm40_vm0, %v783_v26, -inf }
  0x5e   :  { %v450_v46 = vrot.slane %v449_v15, 1  ;;  %v456_v8 = vmax.f32 %v454_v39, %v455_v19  ;;  %v476_v27 = vmax.f32 %v473_v44, %v475_v5  ;;  %v484_v60 = vmax.f32 %v1474_v35, %v1481_v7 }
  0x5f   :  { %v486_v33 = vmax.f32 %v1478_v61, %v1484_v32  ;;  %v1494_v54 = vsel %vm40_vm0, %v785_v58, -inf  ;;  %v508_v12 = vmax.f32 %v1297_v51, %v1286_v29  ;;  %v509_v21 = vmax.f32 %v437_v20, %v1351_v22 }
  0x60   :  { %v1499_v37 = vmax.f32 %v449_v15, %v450_v46  ;;  %v457_v38 = vrot.slane %v456_v8, 2  ;;  %v492_v28 = vsel %vm40_vm0, %v476_v27, -inf  ;;  %v488_v40 = vmax.f32 %v484_v60, %v1487_v41 }
  0x61   :  { %v493_v14 = vrot.slane %v492_v28, 4  ;;  %v490_v45 = vmax.f32 %v486_v33, %v1494_v54  ;;  %v510_v31 = vsel %vm136_vm1, %v508_v12, -inf  ;;  %v518_v49 = vsel %vm145_vm2, %v508_v12, -inf }
  0x62   :  { %786 = vst.msk [vmem:[%s1721_s1 + $0x21] sm:$0x1] %vm78_vm5, %v1499_v37  ;;  %v458_v51 = vmax.f32 %v456_v8, %v457_v38  ;;  %v511_v20 = vrot.slane %v510_v31, 4  ;;  %v519_v11 = vsel %vm147_vm3, %v509_v21, -inf  ;;  %v528_v55 = vsel %vm157_vm4, %v509_v21, -inf }
  0x63   :  { %v494_v57 = vmax.f32 %v492_v28, %v493_v14  ;;  %v491_v59 = vmax.f32 %v488_v40, %v490_v45  ;;  %v520_v13 = vmax.f32 %v518_v49, %v519_v11  ;;  %v529_v17 = vrot.slane %v528_v55, 4 }
  0x64   :  { %v459_v1 = vrot.slane %v458_v51, 1  ;;  %v512_v2 = vmax.f32 %v510_v31, %v511_v20  ;;  %v1515_v3 = vmax.f32 %v1300_v52, %v1322_v23  ;;  %v537_v26 = vmax.f32 %v1303_v56, %v1397_v62 }
  0x65   :  { %v495_v39 = vrot.slane %v494_v57, 2  ;;  %v500_v44 = vsel %vm40_vm0, %v491_v59, -inf  ;;  %v521_v15 = vrot.slane %v520_v13, 4  ;;  %v530_v19 = vmax.f32 %v528_v55, %v529_v17 }
  0x66   :  { %v1520_v5 = vmax.f32 %v458_v51, %v459_v1  ;;  %v501_v58 = vrot.slane %v500_v44, 4  ;;  %v513_v46 = vrot.slane %v512_v2, 2  ;;  %v538_v8 = vmax.f32 %v1515_v3, %v1400_v0 }
  0x67   :  { %v496_v27 = vmax.f32 %v494_v57, %v495_v39  ;;  %v522_v60 = vmax.f32 %v520_v13, %v521_v15  ;;  %v531_v33 = vrot.slane %v530_v19, 2  ;;  %v539_v52 = vmax.f32 %v537_v26, %v1403_v42 }
  0x68   :  { %787 = vst.msk [vmem:[%s1721_s1 + $0x22] sm:$0x1] %vm78_vm5, %v1520_v5  ;;  %v746_v23 = vmax.f32 %v1499_v37, %v1520_v5  ;;  %v502_v62 = vmax.f32 %v500_v44, %v501_v58  ;;  %v514_v12 = vmax.f32 %v512_v2, %v513_v46  ;;  %v542_v21 = vmax.f32 %v1364_v18, %v1455_v4 }
  0x69   :  { %v497_v0 = vrot.slane %v496_v27, 1  ;;  %v523_v38 = vrot.slane %v522_v60, 2  ;;  %v532_v28 = vmax.f32 %v530_v19, %v531_v33  ;;  %v540_v40 = vmax.f32 %v538_v8, %v539_v52 }
  0x6a   :  { %v503_v14 = vrot.slane %v502_v62, 2  ;;  %v515_v42 = vrot.slane %v514_v12, 1  ;;  %v543_v45 = vmax.f32 %v1381_v25, %v1458_v34  ;;  %v544_v31 = vmax.f32 %v542_v21, %v1463_v10 }
  0x6b   :  { %v1537_v49 = vmax.f32 %v496_v27, %v497_v0  ;;  %v524_v51 = vmax.f32 %v522_v60, %v523_v38  ;;  %v533_v20 = vrot.slane %v532_v28, 1  ;;  %v546_v11 = vsel %vm136_vm1, %v540_v40, -inf }
  0x6c   :  { %v504_v55 = vmax.f32 %v502_v62, %v503_v14  ;;  %v516_v57 = vmax.f32 %v514_v12, %v515_v42  ;;  %v547_v4 = vrot.slane %v546_v11, 4  ;;  %v545_v59 = vmax.f32 %v543_v45, %v544_v31 }
  0x6d   :  { %788 = vst.msk [vmem:[%s1721_s1 + $0x23] sm:$0x1] %vm78_vm5, %v1537_v49  ;;  %v525_v13 = vrot.slane %v524_v51, 1  ;;  %v534_v34 = vmax.f32 %v532_v28, %v533_v20  ;;  %v554_v10 = vsel %vm145_vm2, %v540_v40, -inf  ;;  %v572_v17 = vmax.f32 %v1411_v24, %v1427_v30 }
  0x6e   :  { %v505_v1 = vrot.slane %v504_v55, 1  ;;  %790 = vst.msk [vmem:[%s1721_s1 + $0x25] sm:$0x1] %vm78_vm5, %v516_v57  ;;  %v548_v2 = vmax.f32 %v546_v11, %v547_v4  ;;  %v555_v26 = vsel %vm147_vm3, %v545_v59, -inf  ;;  %v564_v39 = vsel %vm157_vm4, %v545_v59, -inf }
  0x6f   :  { %v526_v44 = vmax.f32 %v524_v51, %v525_v13  ;;  %792 = vst.msk [vmem:[%s1721_s1 + $0x27] sm:$0x1] %vm78_vm5, %v534_v34  ;;  %v556_v15 = vmax.f32 %v554_v10, %v555_v26  ;;  %v565_v19 = vrot.slane %v564_v39, 4  ;;  %v1560_v24 = vmax.f32 %v1424_v50, %v1438_v63 }
  0x70   :  { %v1562_v58 = vmax.f32 %v504_v55, %v505_v1  ;;  %v549_v46 = vrot.slane %v548_v2, 2  ;;  %v574_v8 = vmax.f32 %v572_v17, %v1441_v6  ;;  %v576_v27 = vmax.f32 %v1466_v53, %v1484_v32 }
  0x71   :  { %791 = vst.msk [vmem:[%s1721_s1 + $0x26] sm:$0x1] %vm78_vm5, %v526_v44  ;;  %v557_v60 = vrot.slane %v556_v15, 4  ;;  %v566_v33 = vmax.f32 %v564_v39, %v565_v19  ;;  %v1573_v52 = vmax.f32 %v1481_v7, %v1487_v41  ;;  %v606_v50 = vmax.f32 %v1277_v47, %v1286_v29 }
  0x72   :  { %789 = vst.msk [vmem:[%s1721_s1 + $0x24] sm:$0x1] %vm78_vm5, %v1562_v58  ;;  %v550_v63 = vmax.f32 %v548_v2, %v549_v46  ;;  %v575_v53 = vmax.f32 %v574_v8, %v1560_v24  ;;  %v578_v62 = vmax.f32 %v576_v27, %v1494_v54  ;;  %v607_v12 = vmax.f32 %v1349_v9, %v1351_v22 }
  0x73   :  { %v558_v21 = vmax.f32 %v556_v15, %v557_v60  ;;  %v567_v7 = vrot.slane %v566_v33, 2  ;;  %v608_v41 = vsel %vm238_vm6, %v606_v50, -inf  ;;  %v616_v47 = vsel %vm247_vm7, %v606_v50, -inf }
  0x74   :  { %v551_v29 = vrot.slane %v550_v63, 1  ;;  %v580_v0 = vsel %vm136_vm1, %v575_v53, -inf  ;;  %v579_v38 = vmax.f32 %v578_v62, %v1573_v52  ;;  %v588_v28 = vsel %vm145_vm2, %v575_v53, -inf }
  0x75   :  { %v559_v40 = vrot.slane %v558_v21, 2  ;;  %v568_v14 = vmax.f32 %v566_v33, %v567_v7  ;;  %v581_v42 = vrot.slane %v580_v0, 4  ;;  %v609_v45 = vrot.slane %v608_v41, 4 }
  0x76   :  { %v552_v31 = vmax.f32 %v550_v63, %v551_v29  ;;  %v589_v9 = vsel %vm147_vm3, %v579_v38, -inf  ;;  %v598_v22 = vsel %vm157_vm4, %v579_v38, -inf  ;;  %v617_v51 = vrot.slane %v616_v47, 4 }
  0x77   :  { %v560_v20 = vmax.f32 %v558_v21, %v559_v40  ;;  %v569_v11 = vrot.slane %v568_v14, 1  ;;  %v582_v55 = vmax.f32 %v580_v0, %v581_v42  ;;  %v590_v57 = vmax.f32 %v588_v28, %v589_v9 }
  0x78   :  { %793 = vst.msk [vmem:[%s1721_s1 + $0x28] sm:$0x1] %vm78_vm5, %v552_v31  ;;  %v599_v4 = vrot.slane %v598_v22, 4  ;;  %v610_v59 = vmax.f32 %v608_v41, %v609_v45  ;;  %v618_v13 = vmax.f32 %v616_v47, %v617_v51  ;;  %v624_v34 = vsel %vm238_vm6, %v607_v12, -inf }
  0x79   :  { %v561_v10 = vrot.slane %v560_v20, 1  ;;  %v570_v17 = vmax.f32 %v568_v14, %v569_v11  ;;  %v583_v1 = vrot.slane %v582_v55, 2  ;;  %v591_v2 = vrot.slane %v590_v57, 4 }
  0x7a   :  { %v600_v26 = vmax.f32 %v598_v22, %v599_v4  ;;  %v611_v39 = vrot.slane %v610_v59, 2  ;;  %v619_v44 = vrot.slane %v618_v13, 2  ;;  %v625_v15 = vrot.slane %v624_v34, 4 }
  0x7b   :  { %v562_v19 = vmax.f32 %v560_v20, %v561_v10  ;;  %795 = vst.msk [vmem:[%s1721_s1 + $0x2a] sm:$0x1] %vm78_vm5, %v570_v17  ;;  %v584_v46 = vmax.f32 %v582_v55, %v583_v1  ;;  %v592_v8 = vmax.f32 %v590_v57, %v591_v2  ;;  %v632_v27 = vsel %vm247_vm7, %v607_v12, -inf }
  0x7c   :  { %v601_v60 = vrot.slane %v600_v26, 2  ;;  %v612_v33 = vmax.f32 %v610_v59, %v611_v39  ;;  %v620_v50 = vmax.f32 %v618_v13, %v619_v44  ;;  %v626_v63 = vmax.f32 %v624_v34, %v625_v15 }
  0x7d   :  { %794 = vst.msk [vmem:[%s1721_s1 + $0x29] sm:$0x1] %vm78_vm5, %v562_v19  ;;  %v585_v53 = vrot.slane %v584_v46, 1  ;;  %v593_v62 = vrot.slane %v592_v8, 2  ;;  %v633_v21 = vrot.slane %v632_v27, 4  ;;  %v640_v7 = vmax.f32 %v1281_v36, %v1303_v56 }
  0x7e   :  { %v602_v41 = vmax.f32 %v600_v26, %v601_v60  ;;  %v613_v47 = vrot.slane %v612_v33, 1  ;;  %v621_v29 = vrot.slane %v620_v50, 1  ;;  %v627_v0 = vrot.slane %v626_v63, 2 }
  0x7f   :  { %v586_v12 = vmax.f32 %v584_v46, %v585_v53  ;;  %v594_v38 = vmax.f32 %v592_v8, %v593_v62  ;;  %v634_v28 = vmax.f32 %v632_v27, %v633_v21  ;;  %v641_v40 = vmax.f32 %v640_v7, %v1515_v3 }
  0x80   :  { %v603_v14 = vrot.slane %v602_v41, 1  ;;  %v614_v42 = vmax.f32 %v612_v33, %v613_v47  ;;  %v622_v45 = vmax.f32 %v620_v50, %v621_v29  ;;  %v628_v31 = vmax.f32 %v626_v63, %v627_v0 }
  0x81   :  { %796 = vst.msk [vmem:[%s1721_s1 + $0x2b] sm:$0x1] %vm78_vm5, %v586_v12  ;;  %v595_v9 = vrot.slane %v594_v38, 1  ;;  %v635_v36 = vrot.slane %v634_v28, 2  ;;  %v644_v56 = vsel %vm238_vm6, %v641_v40, -inf  ;;  %v652_v22 = vsel %vm247_vm7, %v641_v40, -inf }
  0x82   :  { %v604_v51 = vmax.f32 %v602_v41, %v603_v14  ;;  %799 = vst.msk [vmem:[%s1721_s1 + $0x2e] sm:$0x1] %vm78_vm5, %v614_v42  ;;  %v629_v3 = vrot.slane %v628_v31, 1  ;;  %v645_v20 = vrot.slane %v644_v56, 4  ;;  %v653_v11 = vrot.slane %v652_v22, 4 }
  0x83   :  { %v596_v55 = vmax.f32 %v594_v38, %v595_v9  ;;  %800 = vst.msk [vmem:[%s1721_s1 + $0x2f] sm:$0x1] %vm78_vm5, %v622_v45  ;;  %v636_v57 = vmax.f32 %v634_v28, %v635_v36  ;;  %v642_v4 = vmax.f32 %v1343_v43, %v1364_v18  ;;  %v676_v59 = vmax.f32 %v1408_v48, %v1421_v16 }
  0x84   :  { %798 = vst.msk [vmem:[%s1721_s1 + $0x2d] sm:$0x1] %vm78_vm5, %v604_v51  ;;  %v630_v13 = vmax.f32 %v628_v31, %v629_v3  ;;  %v646_v34 = vmax.f32 %v644_v56, %v645_v20  ;;  %v654_v10 = vmax.f32 %v652_v22, %v653_v11  ;;  %v677_v17 = vmax.f32 %v1474_v35, %v1478_v61 }
  0x85   :  { %797 = vst.msk [vmem:[%s1721_s1 + $0x2c] sm:$0x1] %vm78_vm5, %v596_v55  ;;  %v637_v43 = vrot.slane %v636_v57, 1  ;;  %v643_v18 = vmax.f32 %v642_v4, %v1381_v25  ;;  %v678_v48 = vsel %vm238_vm6, %v676_v59, -inf  ;;  %v686_v16 = vsel %vm247_vm7, %v676_v59, -inf }
  0x86   :  { %801 = vst.msk [vmem:[%s1721_s1 + $0x30] sm:$0x1] %vm78_vm5, %v630_v13  ;;  %v647_v1 = vrot.slane %v646_v34, 2  ;;  %v655_v2 = vrot.slane %v654_v10, 2  ;;  %v679_v35 = vrot.slane %v678_v48, 4  ;;  %v687_v61 = vrot.slane %v686_v16, 4 }
  0x87   :  { %v638_v26 = vmax.f32 %v636_v57, %v637_v43  ;;  %v660_v39 = vsel %vm238_vm6, %v643_v18, -inf  ;;  %v668_v44 = vsel %vm247_vm7, %v643_v18, -inf  ;;  %v694_v25 = vsel %vm238_vm6, %v677_v17, -inf }
  0x88   :  { %v648_v15 = vmax.f32 %v646_v34, %v647_v1  ;;  %v656_v19 = vmax.f32 %v654_v10, %v655_v2  ;;  %v661_v46 = vrot.slane %v660_v39, 4  ;;  %v669_v8 = vrot.slane %v668_v44, 4 }
  0x89   :  { %802 = vst.msk [vmem:[%s1721_s1 + $0x31] sm:$0x1] %vm78_vm5, %v638_v26  ;;  %v680_v27 = vmax.f32 %v678_v48, %v679_v35  ;;  %v688_v60 = vmax.f32 %v686_v16, %v687_v61  ;;  %v695_v33 = vrot.slane %v694_v25, 4  ;;  %v702_v50 = vsel %vm247_vm7, %v677_v17, -inf }
  0x8a   :  { %v649_v63 = vrot.slane %v648_v15, 1  ;;  %v657_v53 = vrot.slane %v656_v19, 1  ;;  %v662_v62 = vmax.f32 %v660_v39, %v661_v46  ;;  %v670_v21 = vmax.f32 %v668_v44, %v669_v8 }
  0x8b   :  { %v681_v7 = vrot.slane %v680_v27, 2  ;;  %v689_v41 = vrot.slane %v688_v60, 2  ;;  %v696_v47 = vmax.f32 %v694_v25, %v695_v33  ;;  %v703_v29 = vrot.slane %v702_v50, 4 }
  0x8c   :  { %v650_v0 = vmax.f32 %v648_v15, %v649_v63  ;;  %v658_v12 = vmax.f32 %v656_v19, %v657_v53  ;;  %v663_v38 = vrot.slane %v662_v62, 2  ;;  %v671_v28 = vrot.slane %v670_v21, 2 }
  0x8d   :  { %v682_v40 = vmax.f32 %v680_v27, %v681_v7  ;;  %v690_v14 = vmax.f32 %v688_v60, %v689_v41  ;;  %v697_v42 = vrot.slane %v696_v47, 2  ;;  %v704_v45 = vmax.f32 %v702_v50, %v703_v29 }
  0x8e   :  { %803 = vst.msk [vmem:[%s1721_s1 + $0x32] sm:$0x1] %vm78_vm5, %v650_v0  ;;  %v664_v31 = vmax.f32 %v662_v62, %v663_v38  ;;  %v672_v9 = vmax.f32 %v670_v21, %v671_v28  ;;  %v710_v36 = vmax.f32 %v1427_v30, %v1441_v6  ;;  %v712_v56 = vmax.f32 %v1484_v32, %v1494_v54 }
  0x8f   :  { %804 = vst.msk [vmem:[%s1721_s1 + $0x33] sm:$0x1] %vm78_vm5, %v658_v12  ;;  %v683_v22 = vrot.slane %v682_v40, 1  ;;  %v691_v51 = vrot.slane %v690_v14, 1  ;;  %v698_v3 = vmax.f32 %v696_v47, %v697_v42  ;;  %v705_v20 = vrot.slane %v704_v45, 2 }
  0x90   :  { %v665_v11 = vrot.slane %v664_v31, 1  ;;  %v673_v55 = vrot.slane %v672_v9, 1  ;;  %v711_v57 = vmax.f32 %v1560_v24, %v710_v36  ;;  %v713_v4 = vmax.f32 %v1573_v52, %v712_v56 }
  0x91   :  { %v684_v59 = vmax.f32 %v682_v40, %v683_v22  ;;  %v692_v30 = vmax.f32 %v690_v14, %v691_v51  ;;  %v699_v6 = vrot.slane %v698_v3, 1  ;;  %v706_v13 = vmax.f32 %v704_v45, %v705_v20 }
  0x92   :  { %v666_v32 = vmax.f32 %v664_v31, %v665_v11  ;;  %v674_v54 = vmax.f32 %v672_v9, %v673_v55  ;;  %v714_v34 = vsel %vm238_vm6, %v711_v57, -inf  ;;  %v722_v10 = vsel %vm247_vm7, %v711_v57, -inf }
  0x93   :  { %807 = vst.msk [vmem:[%s1721_s1 + $0x36] sm:$0x1] %vm78_vm5, %v684_v59  ;;  %v700_v17 = vmax.f32 %v698_v3, %v699_v6  ;;  %v707_v43 = vrot.slane %v706_v13, 1  ;;  %v715_v24 = vrot.slane %v714_v34, 4  ;;  %v723_v18 = vrot.slane %v722_v10, 4 }
  0x94   :  { %805 = vst.msk [vmem:[%s1721_s1 + $0x34] sm:$0x1] %vm78_vm5, %v666_v32  ;;  %v730_v52 = vsel %vm238_vm6, %v713_v4, -inf  ;;  %v738_v48 = vsel %vm247_vm7, %v713_v4, -inf  ;;  %v747_v16 = vmax.f32 %v746_v23, %v1537_v49 }
  0x95   :  { %806 = vst.msk [vmem:[%s1721_s1 + $0x35] sm:$0x1] %vm78_vm5, %v674_v54  ;;  %v708_v1 = vmax.f32 %v706_v13, %v707_v43  ;;  %v716_v2 = vmax.f32 %v714_v34, %v715_v24  ;;  %v724_v35 = vmax.f32 %v722_v10, %v723_v18  ;;  %v731_v61 = vrot.slane %v730_v52, 4 }
  0x96   :  { %808 = vst.msk [vmem:[%s1721_s1 + $0x37] sm:$0x1] %vm78_vm5, %v692_v30  ;;  %v739_v26 = vrot.slane %v738_v48, 4  ;;  %v748_v39 = vmax.f32 %v747_v16, %v1562_v58 }
  0x97   :  { %809 = vst.msk [vmem:[%s1721_s1 + $0x38] sm:$0x1] %vm78_vm5, %v700_v17  ;;  %v717_v37 = vrot.slane %v716_v2, 2  ;;  %v725_v5 = vrot.slane %v724_v35, 2  ;;  %v732_v23 = vmax.f32 %v730_v52, %v731_v61 }
  0x98   :  { %810 = vst.msk [vmem:[%s1721_s1 + $0x39] sm:$0x1] %vm78_vm5, %v708_v1  ;;  %v740_v49 = vmax.f32 %v738_v48, %v739_v26 }
  0x99   :  { %v718_v44 = vmax.f32 %v716_v2, %v717_v37  ;;  %v726_v25 = vmax.f32 %v724_v35, %v725_v5  ;;  %v733_v15 = vrot.slane %v732_v23, 2  ;;  %815 = vst.msk [vmem:[%s1721_s1 + $0x20] sm:$0x1] %vm78_vm5, %v748_v39 }
  0x9a   :  { %v741_v58 = vrot.slane %v740_v49, 2 }
  0x9b   :  { %v719_v19 = vrot.slane %v718_v44, 1  ;;  %v727_v46 = vrot.slane %v726_v25, 1  ;;  %v734_v8 = vmax.f32 %v732_v23, %v733_v15 }
  0x9c   :  { %v742_v27 = vmax.f32 %v740_v49, %v741_v58 }
  0x9d   :  { %v720_v60 = vmax.f32 %v718_v44, %v719_v19  ;;  %v728_v33 = vmax.f32 %v726_v25, %v727_v46  ;;  %v735_v50 = vrot.slane %v734_v8, 1 }
  0x9e   :  { %v743_v63 = vrot.slane %v742_v27, 1 }
  0x9f   :  { %811 = vst.msk [vmem:[%s1721_s1 + $0x3a] sm:$0x1] %vm78_vm5, %v720_v60  ;;  %v736_v53 = vmax.f32 %v734_v8, %v735_v50 }
  0xa0   :  { %812 = vst.msk [vmem:[%s1721_s1 + $0x3b] sm:$0x1] %vm78_vm5, %v728_v33  ;;  %v744_v62 = vmax.f32 %v742_v27, %v743_v63 }
  0xa1   :  { %813 = vst.msk [vmem:[%s1721_s1 + $0x3c] sm:$0x1] %vm78_vm5, %v736_v53 }
  0xa2   :  { %814 = vst.msk [vmem:[%s1721_s1 + $0x3d] sm:$0x1] %vm78_vm5, %v744_v62 }

</bundles_post_ra>
